<compile_context>
chip_gen: v7x
topology: tpu7x:2x2x1
jax: 0.10.0
libtpu: 0.0.40
codegen_flags: <defaults>
</compile_context>

<pallas_src>
import jax
import jax.numpy as jnp
from jax import lax
from jax.experimental import pallas as pl
from jax.experimental.pallas import tpu as pltpu

_VMEM_LIMIT = 48 * 1024 * 1024


# ------------------------- matmul + bias Pallas kernel -------------------------
def _matmul_bias_kernel(a_ref, w_ref, b_ref, o_ref):
    o_ref[...] = (jnp.dot(a_ref[...], w_ref[...],
                          preferred_element_type=jnp.float32)
                  + b_ref[...]).astype(o_ref.dtype)


def _row_block(m):
    """Row tile: whole M for small problems, else a power-of-two divisor."""
    if m <= 512 or m % 8 != 0:
        return m
    for cand in (512, 256, 128, 64, 32, 16, 8):
        if m % cand == 0:
            return cand
    return m


def _col_block(n):
    """Column tile for the output/weights: full N when small, else 128-aligned."""
    if n <= 2048 or n % 128 != 0:
        return n
    for cand in (1024, 512, 256, 128):
        if n % cand == 0:
            return cand
    return n


def _matmul_bias(a, w, b, out_dtype=jnp.float32):
    """(M, K) @ (K, N) + (1, N); row- and column-tiled; f32 accumulation.

    a/w are expected in bf16 (MXU-native), bias stays f32 for the epilogue add.
    """
    M, K = a.shape
    N = w.shape[1]
    tm = _row_block(M)
    tn = _col_block(N)
    grid_spec = pltpu.PrefetchScalarGridSpec(
        num_scalar_prefetch=0,
        grid=(M // tm, N // tn),
        in_specs=[
            pl.BlockSpec((tm, K), lambda i, j: (i, 0)),
            pl.BlockSpec((K, tn), lambda i, j: (0, j)),
            pl.BlockSpec((1, tn), lambda i, j: (0, j)),
        ],
        out_specs=pl.BlockSpec((tm, tn), lambda i, j: (i, j)),
    )
    return pl.pallas_call(
        _matmul_bias_kernel,
        grid_spec=grid_spec,
        out_shape=jax.ShapeDtypeStruct((M, N), out_dtype),
        compiler_params=pltpu.CompilerParams(
            dimension_semantics=("parallel", "parallel"),
            vmem_limit_bytes=_VMEM_LIMIT),
    )(a, w, b)


# --------------------------- LSTM recurrence kernel -----------------------------
def _lstm_recurrence_kernel(gin_ref, h0i_ref, c0i_ref,
                            whh0_ref, wih1_ref, whh1_ref, b1_ref,
                            hid_ref, hn_ref, cn_ref):
    """One grid step == T_BLK time steps of the 2-layer LSTM (hidden path only; the
    layer-0 input projection and the vocab projection are hoisted out of the loop)."""
    t_blk = pl.program_id(1)
    H = whh0_ref.shape[0]
    T_BLK = gin_ref.shape[0]

    # Seed the VMEM-resident running state (h_n / c_n output blocks have a constant
    # block index along the time axis) at the first time block of this batch block.
    @pl.when(t_blk == 0)
    def _():
        hn_ref[...] = h0i_ref[...]
        cn_ref[...] = c0i_ref[...]

    # Weights hoisted out of the unrolled loop (bf16, MXU-native).
    whh0 = whh0_ref[...]
    wih1 = wih1_ref[...]
    whh1 = whh1_ref[...]
    b1 = b1_ref[...]                 # f32

    def gates_to_hc(gates, c_prev):
        # PyTorch gate order [i | f | g | o]; all elementwise math kept in f32
        # (v5e has no bf16 VPU/EUP datapath).
        i_g = jax.nn.sigmoid(gates[:, 0:H])
        f_g = jax.nn.sigmoid(gates[:, H:2 * H])
        g_g = jnp.tanh(gates[:, 2 * H:3 * H])
        o_g = jax.nn.sigmoid(gates[:, 3 * H:4 * H])
        c_new = f_g * c_prev + i_g * g_g
        h_new = o_g * jnp.tanh(c_new)
        return h_new, c_new

    def step(tl, carry):
        h0, c0, h1, c1 = carry
        # Layer 0: x-projection precomputed (gin = x @ W_ih0 + b0, bf16); only the
        # h @ W_hh push remains inside the recurrence.
        g0 = (jnp.dot(h0.astype(whh0.dtype), whh0,
                      preferred_element_type=jnp.float32)
              + gin_ref[tl].astype(jnp.float32))
        h0, c0 = gates_to_hc(g0, c0)
        # Layer 1: two direct MXU pushes (no VMEM staging / masked partial stores).
        g1 = (jnp.dot(h0.astype(wih1.dtype), wih1,
                      preferred_element_type=jnp.float32)
              + jnp.dot(h1.astype(whh1.dtype), whh1,
                        preferred_element_type=jnp.float32)
              + b1)
        h1, c1 = gates_to_hc(g1, c1)
        hid_ref[tl] = h1.astype(hid_ref.dtype)
        return (h0, c0, h1, c1)

    carry0 = (hn_ref[0], cn_ref[0], hn_ref[1], cn_ref[1])
    h0, c0, h1, c1 = lax.fori_loop(0, T_BLK, step, carry0, unroll=True)

    hn_ref[0] = h0
    hn_ref[1] = h1
    cn_ref[0] = c0
    cn_ref[1] = c1


# --------------------------------- wrapper --------------------------------------
def _time_block(t):
    # Up to 32 unrolled steps per grid invocation (amortizes per-step pipeline cost;
    # affordable now that gin is bf16 and the [h0|h1] scratch is gone).
    for cand in (32, 16, 8, 4, 2, 1):
        if cand <= t and t % cand == 0:
            return cand
    return t


def _batch_block(b, h):
    """Batch tile: as large as the spill budget allows (MXU row fill), but with >=2
    blocks when possible so v7x's two TensorCores both get work."""
    if b % 8 != 0:
        return b                               # small/odd batches: single block
    # Keep 4 f32 carries (h0,c0,h1,c1) within ~128 KiB to avoid vreg spilling.
    cap = max(8, (128 * 1024) // (4 * h * 4))
    best = 8
    for cand in (128, 64, 32, 16, 8):
        if cand <= cap and b % cand == 0:
            best = cand
            break
    # Prefer at least 2 batch blocks (v7x dual-TC) if halving stays 8-aligned.
    if b // best < 2 and b >= 16 and (b // 2) % 8 == 0 and (b // 2) <= cap:
        best = b // 2
    return best


@jax.jit
def mymodel_forward(xs_embedding, params, h_0=None, c_0=None):
    """Mirrors Mymodel.forward: returns (pre, (h_n, c_n)).

    xs_embedding: (B, T, E) float32
    pre:          (B*T, word_size) float32   (== Flatten(0,1) of (B, T, word_size))
    h_n, c_n:     (2, B, hidden_num) float32
    """
    B, T, E = xs_embedding.shape
    H = params["whh0"].shape[0]

    if h_0 is None or c_0 is None:
        h_0 = jnp.zeros((2, B, H), jnp.float32)
        c_0 = jnp.zeros((2, B, H), jnp.float32)

    x_tbe = jnp.transpose(xs_embedding, (1, 0, 2))                     # (T, B, E)

    # Hoisted layer-0 input projection: one big MXU matmul over all T*B rows,
    # bf16 operands + f32 accumulation; gin stored bf16 (halves HBM round trip).
    gin = _matmul_bias(
        x_tbe.reshape(T * B, E).astype(jnp.bfloat16),
        params["wih0"].astype(jnp.bfloat16),
        params["b0"],
        out_dtype=jnp.bfloat16,
    ).reshape(T, B, 4 * H)

    T_BLK = _time_block(T)
    B_BLK = _batch_block(B, H)
    nt = T // T_BLK
    nb = B // B_BLK

    state_spec = pl.BlockSpec((2, B_BLK, H), lambda b, t: (0, b, 0))
    const2d = lambda shape: pl.BlockSpec(shape, lambda b, t: (0, 0))
    grid_spec = pltpu.PrefetchScalarGridSpec(
        num_scalar_prefetch=0,
        grid=(nb, nt),
        in_specs=[
            pl.BlockSpec((T_BLK, B_BLK, 4 * H), lambda b, t: (t, b, 0)),  # gin (bf16)
            state_spec,                                                   # h_0 (f32)
            state_spec,                                                   # c_0 (f32)
            const2d((H, 4 * H)),                                          # W_hh0 (bf16)
            const2d((H, 4 * H)),                                          # W_ih1 (bf16)
            const2d((H, 4 * H)),                                          # W_hh1 (bf16)
            const2d((1, 4 * H)),                                          # b1    (f32)
        ],
        out_specs=[
            pl.BlockSpec((T_BLK, B_BLK, H), lambda b, t: (t, b, 0)),      # hidden (bf16)
            state_spec,                                                   # h_n
            state_spec,                                                   # c_n
        ],
    )

    hid_tbh, h_n, c_n = pl.pallas_call(
        _lstm_recurrence_kernel,
        grid_spec=grid_spec,
        out_shape=(
            jax.ShapeDtypeStruct((T, B, H), jnp.bfloat16),
            jax.ShapeDtypeStruct((2, B, H), jnp.float32),
            jax.ShapeDtypeStruct((2, B, H), jnp.float32),
        ),
        compiler_params=pltpu.CompilerParams(
            dimension_semantics=("parallel", "arbitrary"),  # batch parallel, time serial
            vmem_limit_bytes=_VMEM_LIMIT),
    )(gin,
      h_0.astype(jnp.float32), c_0.astype(jnp.float32),
      params["whh0"].astype(jnp.bfloat16),
      params["wih1"].astype(jnp.bfloat16),
      params["whh1"].astype(jnp.bfloat16),
      params["b1"])

    # Dropout(0.3) == identity in eval mode.
    # Flatten(0,1) of batch-first hidden (cheap bf16 transpose), then ONE big
    # lane-dense, N-tiled vocab projection (logits land directly in final layout).
    hidden_flat = jnp.transpose(hid_tbh, (1, 0, 2)).reshape(B * T, H)
    pre = _matmul_bias(hidden_flat, params["wlin"].astype(jnp.bfloat16),
                       params["blin"], out_dtype=jnp.float32)
    return pre, (h_n, c_n)


# ----------------------- deterministic parameter init ---------------------------
def init_params(key, embedding_num, hidden_num, word_size):
    """Shapes match nn.LSTM(num_layers=2) + nn.Linear; stored pre-transposed for x @ W."""
    H, E, W = hidden_num, embedding_num, word_size
    k = 1.0 / jnp.sqrt(jnp.float32(H))
    keys = jax.random.split(key, 10)
    u = lambda kk, shape: jax.random.uniform(kk, shape, jnp.float32, -k, k)
    return {
        "wih0": u(keys[0], (E, 4 * H)),
        "whh0": u(keys[1], (H, 4 * H)),
        "b0":   u(keys[2], (1, 4 * H)) + u(keys[3], (1, 4 * H)),  # b_ih + b_hh
        "wih1": u(keys[4], (H, 4 * H)),
        "whh1": u(keys[5], (H, 4 * H)),
        "b1":   u(keys[6], (1, 4 * H)) + u(keys[7], (1, 4 * H)),
        "wlin": u(keys[8], (H, W)),
        "blin": u(keys[9], (1, W)),
    }


# --------------------------- pure-JAX reference ----------------------------------
def reference_forward(xs_embedding, params, h_0, c_0):
    B, T, E = xs_embedding.shape
    H = params["whh0"].shape[0]

    def cell(x_in, h, c, wih, whh, b):
        gates = x_in @ wih + h @ whh + b
        i = jax.nn.sigmoid(gates[:, 0:H])
        f = jax.nn.sigmoid(gates[:, H:2 * H])
        g = jnp.tanh(gates[:, 2 * H:3 * H])
        o = jax.nn.sigmoid(gates[:, 3 * H:4 * H])
        c_new = f * c + i * g
        return o * jnp.tanh(c_new), c_new

    def step(carry, x_t):
        h0, c0, h1, c1 = carry
        h0, c0 = cell(x_t, h0, c0, params["wih0"], params["whh0"], params["b0"])
        h1, c1 = cell(h0, h1, c1, params["wih1"], params["whh1"], params["b1"])
        return (h0, c0, h1, c1), h1

    x_tbe = jnp.transpose(xs_embedding, (1, 0, 2))
    (h0, c0, h1, c1), hid = lax.scan(step, (h_0[0], c_0[0], h_0[1], c_0[1]), x_tbe)
    hidden = jnp.transpose(hid, (1, 0, 2))                       # (B, T, H)
    pre = hidden.reshape(B * T, H) @ params["wlin"] + params["blin"]
    return pre, (jnp.stack([h0, h1]), jnp.stack([c0, c1]))


# ----------------------------------- main -----------------------------------------
if __name__ == "__main__":
    embedding_num, hidden_num, word_size = 16, 32, 64
    B, T = 2, 8

    key = jax.random.PRNGKey(0)
    k_param, k_x = jax.random.split(key)
    params = init_params(k_param, embedding_num, hidden_num, word_size)
    xs_embedding = jax.random.normal(k_x, (B, T, embedding_num), jnp.float32)

    pre, (h_n, c_n) = mymodel_forward(xs_embedding, params)
    jax.block_until_ready((pre, h_n, c_n))

    # correctness check against pure-JAX f32 reference (bf16 MXU operands => looser tol)
    h0 = jnp.zeros((2, B, hidden_num), jnp.float32)
    c0 = jnp.zeros((2, B, hidden_num), jnp.float32)
    pre_ref, (hn_ref, cn_ref) = reference_forward(xs_embedding, params, h0, c0)
    assert pre.shape == (B * T, word_size)
    assert h_n.shape == (2, B, hidden_num) and c_n.shape == (2, B, hidden_num)
    assert jnp.allclose(pre, pre_ref, atol=5e-2, rtol=5e-2)
    assert jnp.allclose(h_n, hn_ref, atol=5e-2, rtol=5e-2)
    assert jnp.allclose(c_n, cn_ref, atol=5e-2, rtol=5e-2)

    print("KERNEL_OK")
</pallas_src>

<mosaic_0001>
module attributes {stable_mosaic.version = 11 : i64} {
  func.func @_matmul_bias_kernel(%arg0: i32, %arg1: i32, %arg2: memref<16x16xbf16, #tpu.memory_space<vmem>>, %arg3: memref<16x128xbf16, #tpu.memory_space<vmem>>, %arg4: memref<1x128xf32, #tpu.memory_space<vmem>>, %arg5: memref<16x128xbf16, #tpu.memory_space<vmem>>) attributes {dimension_semantics = [#tpu.dimension_semantics<parallel>, #tpu.dimension_semantics<parallel>], iteration_bounds = array<i64: 1, 1>, scalar_prefetch = 0 : i64, scratch_operands = 0 : i64, tpu.core_type = #tpu.core_type<tc>, window_params = [{transform_indices = @transform_0, window_bounds = array<i64: 16, 16>}, {transform_indices = @transform_1, window_bounds = array<i64: 16, 128>}, {transform_indices = @transform_2, window_bounds = array<i64: 1, 128>}, {transform_indices = @transform_3, window_bounds = array<i64: 16, 128>}]} {
    %c0 = arith.constant 0 : index
    %c0_0 = arith.constant 0 : index
    %0 = vector.load %arg2[%c0, %c0_0] : memref<16x16xbf16, #tpu.memory_space<vmem>>, vector<16x16xbf16>
    %c0_1 = arith.constant 0 : index
    %c0_2 = arith.constant 0 : index
    %1 = vector.load %arg3[%c0_1, %c0_2] : memref<16x128xbf16, #tpu.memory_space<vmem>>, vector<16x128xbf16>
    %cst = arith.constant dense<0.000000e+00> : vector<16x128xf32>
    %2 = tpu.matmul %0, %1, %cst {dimension_numbers = #tpu.dot_dimension_numbers<[1], [0], [0], [1], [0, 0, 1, 1], [], []>} : vector<16x16xbf16>, vector<16x128xbf16>, vector<16x128xf32> -> vector<16x128xf32>
    %c0_3 = arith.constant 0 : index
    %c0_4 = arith.constant 0 : index
    %3 = vector.load %arg4[%c0_3, %c0_4] : memref<1x128xf32, #tpu.memory_space<vmem>>, vector<1x128xf32>
    %4 = vector.broadcast %3 : vector<1x128xf32> to vector<16x128xf32>
    %5 = arith.addf %2, %4 : vector<16x128xf32>
    %6 = arith.truncf %5 : vector<16x128xf32> to vector<16x128xbf16>
    %c0_5 = arith.constant 0 : index
    %c0_6 = arith.constant 0 : index
    %7 = vector.load %arg5[%c0_5, %c0_6] : memref<16x128xbf16, #tpu.memory_space<vmem>>, vector<16x128xbf16>
    tpu.vector_store %arg5[%c0_5, %c0_6], %6 {strides = array<i32>} : memref<16x128xbf16, #tpu.memory_space<vmem>>, vector<16x128xbf16>,
    return
  }
  func.func @transform_0(%arg0: i32, %arg1: i32) -> (i32, i32) {
    %c0_i32 = arith.constant 0 : i32
    %c0_i32_0 = arith.constant 0 : i32
    return %arg0, %c0_i32 : i32, i32
  }
  func.func @transform_1(%arg0: i32, %arg1: i32) -> (i32, i32) {
    %c0_i32 = arith.constant 0 : i32
    %c0_i32_0 = arith.constant 0 : i32
    return %c0_i32, %arg1 : i32, i32
  }
  func.func @transform_2(%arg0: i32, %arg1: i32) -> (i32, i32) {
    %c0_i32 = arith.constant 0 : i32
    %c0_i32_0 = arith.constant 0 : i32
    return %c0_i32, %arg1 : i32, i32
  }
  func.func @transform_3(%arg0: i32, %arg1: i32) -> (i32, i32) {
    %c0_i32 = arith.constant 0 : i32
    return %arg0, %arg1 : i32, i32
  }
}

module attributes {stable_mosaic.version = 11 : i64} {
  func.func @_matmul_bias_kernel(%arg0: i32, %arg1: i32, %arg2: memref<16x32xbf16, #tpu.memory_space<vmem>>, %arg3: memref<32x64xbf16, #tpu.memory_space<vmem>>, %arg4: memref<1x64xf32, #tpu.memory_space<vmem>>, %arg5: memref<16x64xf32, #tpu.memory_space<vmem>>) attributes {dimension_semantics = [#tpu.dimension_semantics<parallel>, #tpu.dimension_semantics<parallel>], iteration_bounds = array<i64: 1, 1>, scalar_prefetch = 0 : i64, scratch_operands = 0 : i64, tpu.core_type = #tpu.core_type<tc>, window_params = [{transform_indices = @transform_0, window_bounds = array<i64: 16, 32>}, {transform_indices = @transform_1, window_bounds = array<i64: 32, 64>}, {transform_indices = @transform_2, window_bounds = array<i64: 1, 64>}, {transform_indices = @transform_3, window_bounds = array<i64: 16, 64>}]} {
    %c0 = arith.constant 0 : index
    %c0_0 = arith.constant 0 : index
    %0 = vector.load %arg2[%c0, %c0_0] : memref<16x32xbf16, #tpu.memory_space<vmem>>, vector<16x32xbf16>
    %c0_1 = arith.constant 0 : index
    %c0_2 = arith.constant 0 : index
    %1 = vector.load %arg3[%c0_1, %c0_2] : memref<32x64xbf16, #tpu.memory_space<vmem>>, vector<32x64xbf16>
    %cst = arith.constant dense<0.000000e+00> : vector<16x64xf32>
    %2 = tpu.matmul %0, %1, %cst {dimension_numbers = #tpu.dot_dimension_numbers<[1], [0], [0], [1], [0, 0, 1, 1], [], []>} : vector<16x32xbf16>, vector<32x64xbf16>, vector<16x64xf32> -> vector<16x64xf32>
    %c0_3 = arith.constant 0 : index
    %c0_4 = arith.constant 0 : index
    %3 = vector.load %arg4[%c0_3, %c0_4] : memref<1x64xf32, #tpu.memory_space<vmem>>, vector<1x64xf32>
    %4 = vector.broadcast %3 : vector<1x64xf32> to vector<16x64xf32>
    %5 = arith.addf %2, %4 : vector<16x64xf32>
    %c0_5 = arith.constant 0 : index
    %c0_6 = arith.constant 0 : index
    %6 = vector.load %arg5[%c0_5, %c0_6] : memref<16x64xf32, #tpu.memory_space<vmem>>, vector<16x64xf32>
    tpu.vector_store %arg5[%c0_5, %c0_6], %5 {strides = array<i32>} : memref<16x64xf32, #tpu.memory_space<vmem>>, vector<16x64xf32>,
    return
  }
  func.func @transform_0(%arg0: i32, %arg1: i32) -> (i32, i32) {
    %c0_i32 = arith.constant 0 : i32
    %c0_i32_0 = arith.constant 0 : i32
    return %arg0, %c0_i32 : i32, i32
  }
  func.func @transform_1(%arg0: i32, %arg1: i32) -> (i32, i32) {
    %c0_i32 = arith.constant 0 : i32
    %c0_i32_0 = arith.constant 0 : i32
    return %c0_i32, %arg1 : i32, i32
  }
  func.func @transform_2(%arg0: i32, %arg1: i32) -> (i32, i32) {
    %c0_i32 = arith.constant 0 : i32
    %c0_i32_0 = arith.constant 0 : i32
    return %c0_i32, %arg1 : i32, i32
  }
  func.func @transform_3(%arg0: i32, %arg1: i32) -> (i32, i32) {
    %c0_i32 = arith.constant 0 : i32
    return %arg0, %arg1 : i32, i32
  }
}

module attributes {stable_mosaic.version = 11 : i64} {
  func.func @_lstm_recurrence_kernel(%arg0: i32, %arg1: i32, %arg2: memref<8x2x128xbf16, #tpu.memory_space<vmem>>, %arg3: memref<2x2x32xf32, #tpu.memory_space<vmem>>, %arg4: memref<2x2x32xf32, #tpu.memory_space<vmem>>, %arg5: memref<32x128xbf16, #tpu.memory_space<vmem>>, %arg6: memref<32x128xbf16, #tpu.memory_space<vmem>>, %arg7: memref<32x128xbf16, #tpu.memory_space<vmem>>, %arg8: memref<1x128xf32, #tpu.memory_space<vmem>>, %arg9: memref<8x2x32xbf16, #tpu.memory_space<vmem>>, %arg10: memref<2x2x32xf32, #tpu.memory_space<vmem>>, %arg11: memref<2x2x32xf32, #tpu.memory_space<vmem>>) attributes {dimension_semantics = [#tpu.dimension_semantics<parallel>, #tpu.dimension_semantics<arbitrary>], iteration_bounds = array<i64: 1, 1>, scalar_prefetch = 0 : i64, scratch_operands = 0 : i64, tpu.core_type = #tpu.core_type<tc>, window_params = [{transform_indices = @transform_0, window_bounds = array<i64: 8, 2, 128>}, {transform_indices = @transform_1, window_bounds = array<i64: 2, 2, 32>}, {transform_indices = @transform_2, window_bounds = array<i64: 2, 2, 32>}, {pipeline_mode = #tpu.pipeline_mode<synchronous>, transform_indices = @transform_3, window_bounds = array<i64: 32, 128>}, {pipeline_mode = #tpu.pipeline_mode<synchronous>, transform_indices = @transform_4, window_bounds = array<i64: 32, 128>}, {pipeline_mode = #tpu.pipeline_mode<synchronous>, transform_indices = @transform_5, window_bounds = array<i64: 32, 128>}, {pipeline_mode = #tpu.pipeline_mode<synchronous>, transform_indices = @transform_6, window_bounds = array<i64: 1, 128>}, {transform_indices = @transform_7, window_bounds = array<i64: 8, 2, 32>}, {transform_indices = @transform_8, window_bounds = array<i64: 2, 2, 32>}, {transform_indices = @transform_9, window_bounds = array<i64: 2, 2, 32>}]} {
    %c0_i32 = arith.constant 0 : i32
    %0 = arith.cmpi eq, %arg1, %c0_i32 : i32
    %1 = arith.extui %0 : i1 to i32
    %c0_i32_0 = arith.constant 0 : i32
    %2 = arith.cmpi ne, %1, %c0_i32_0 : i32
    scf.if %2 {
      %c0_135 = arith.constant 0 : index
      %c0_136 = arith.constant 0 : index
      %c0_137 = arith.constant 0 : index
      %579 = vector.load %arg3[%c0_135, %c0_136, %c0_137] : memref<2x2x32xf32, #tpu.memory_space<vmem>>, vector<2x2x32xf32>
      %c0_138 = arith.constant 0 : index
      %c0_139 = arith.constant 0 : index
      %c0_140 = arith.constant 0 : index
      %580 = vector.load %arg10[%c0_138, %c0_139, %c0_140] : memref<2x2x32xf32, #tpu.memory_space<vmem>>, vector<2x2x32xf32>
      tpu.vector_store %arg10[%c0_138, %c0_139, %c0_140], %579 {strides = array<i32>} : memref<2x2x32xf32, #tpu.memory_space<vmem>>, vector<2x2x32xf32>,
      %c0_141 = arith.constant 0 : index
      %c0_142 = arith.constant 0 : index
      %c0_143 = arith.constant 0 : index
      %581 = vector.load %arg4[%c0_141, %c0_142, %c0_143] : memref<2x2x32xf32, #tpu.memory_space<vmem>>, vector<2x2x32xf32>
      %c0_144 = arith.constant 0 : index
      %c0_145 = arith.constant 0 : index
      %c0_146 = arith.constant 0 : index
      %582 = vector.load %arg11[%c0_144, %c0_145, %c0_146] : memref<2x2x32xf32, #tpu.memory_space<vmem>>, vector<2x2x32xf32>
      tpu.vector_store %arg11[%c0_144, %c0_145, %c0_146], %581 {strides = array<i32>} : memref<2x2x32xf32, #tpu.memory_space<vmem>>, vector<2x2x32xf32>,
    } else {
    }
    %c0 = arith.constant 0 : index
    %c0_1 = arith.constant 0 : index
    %3 = vector.load %arg5[%c0, %c0_1] : memref<32x128xbf16, #tpu.memory_space<vmem>>, vector<32x128xbf16>
    %c0_2 = arith.constant 0 : index
    %c0_3 = arith.constant 0 : index
    %4 = vector.load %arg6[%c0_2, %c0_3] : memref<32x128xbf16, #tpu.memory_space<vmem>>, vector<32x128xbf16>
    %c0_4 = arith.constant 0 : index
    %c0_5 = arith.constant 0 : index
    %5 = vector.load %arg7[%c0_4, %c0_5] : memref<32x128xbf16, #tpu.memory_space<vmem>>, vector<32x128xbf16>
    %c0_6 = arith.constant 0 : index
    %c0_7 = arith.constant 0 : index
    %6 = vector.load %arg8[%c0_6, %c0_7] : memref<1x128xf32, #tpu.memory_space<vmem>>, vector<1x128xf32>
    %c0_8 = arith.constant 0 : index
    %c0_9 = arith.constant 0 : index
    %c0_10 = arith.constant 0 : index
    %7 = vector.load %arg10[%c0_8, %c0_9, %c0_10] : memref<2x2x32xf32, #tpu.memory_space<vmem>>, vector<1x2x32xf32>
    %8 = vector.shape_cast %7 : vector<1x2x32xf32> to vector<2x32xf32>
    %c0_11 = arith.constant 0 : index
    %c0_12 = arith.constant 0 : index
    %c0_13 = arith.constant 0 : index
    %9 = vector.load %arg11[%c0_11, %c0_12, %c0_13] : memref<2x2x32xf32, #tpu.memory_space<vmem>>, vector<1x2x32xf32>
    %10 = vector.shape_cast %9 : vector<1x2x32xf32> to vector<2x32xf32>
    %c1 = arith.constant 1 : index
    %c0_14 = arith.constant 0 : index
    %c0_15 = arith.constant 0 : index
    %11 = vector.load %arg10[%c1, %c0_14, %c0_15] : memref<2x2x32xf32, #tpu.memory_space<vmem>>, vector<1x2x32xf32>
    %12 = vector.shape_cast %11 : vector<1x2x32xf32> to vector<2x32xf32>
    %c1_16 = arith.constant 1 : index
    %c0_17 = arith.constant 0 : index
    %c0_18 = arith.constant 0 : index
    %13 = vector.load %arg11[%c1_16, %c0_17, %c0_18] : memref<2x2x32xf32, #tpu.memory_space<vmem>>, vector<1x2x32xf32>
    %14 = vector.shape_cast %13 : vector<1x2x32xf32> to vector<2x32xf32>
    %c0_i32_19 = arith.constant 0 : i32
    %15 = arith.truncf %8 : vector<2x32xf32> to vector<2x32xbf16>
    %cst = arith.constant dense<0.000000e+00> : vector<2x128xf32>
    %16 = tpu.matmul %15, %3, %cst {dimension_numbers = #tpu.dot_dimension_numbers<[1], [0], [0], [1], [0, 0, 1, 1], [], []>} : vector<2x32xbf16>, vector<32x128xbf16>, vector<2x128xf32> -> vector<2x128xf32>
    %17 = arith.index_cast %c0_i32_19 : i32 to index
    %c0_20 = arith.constant 0 : index
    %c0_21 = arith.constant 0 : index
    %18 = vector.load %arg2[%17, %c0_20, %c0_21] : memref<8x2x128xbf16, #tpu.memory_space<vmem>>, vector<1x2x128xbf16>
    %19 = vector.shape_cast %18 : vector<1x2x128xbf16> to vector<2x128xbf16>
    %20 = arith.extf %19 : vector<2x128xbf16> to vector<2x128xf32>
    %21 = arith.addf %16, %20 : vector<2x128xf32>
    %22 = vector.extract_strided_slice %21 {offsets = [0, 0], sizes = [2, 32], strides = [1, 1]} : vector<2x128xf32> to vector<2x32xf32>
    %23 = arith.negf %22 : vector<2x32xf32>
    %24 = math.exp %23 : vector<2x32xf32>
    %cst_22 = arith.constant 1.000000e+00 : f32
    %25 = vector.broadcast %cst_22 : f32 to vector<2x32xf32>
    %26 = arith.addf %25, %24 : vector<2x32xf32>
    %27 = arith.divf %25, %26 : vector<2x32xf32>
    %28 = vector.extract_strided_slice %21 {offsets = [0, 32], sizes = [2, 32], strides = [1, 1]} : vector<2x128xf32> to vector<2x32xf32>
    %29 = arith.negf %28 : vector<2x32xf32>
    %30 = math.exp %29 : vector<2x32xf32>
    %cst_23 = arith.constant 1.000000e+00 : f32
    %31 = vector.broadcast %cst_23 : f32 to vector<2x32xf32>
    %32 = arith.addf %31, %30 : vector<2x32xf32>
    %33 = arith.divf %31, %32 : vector<2x32xf32>
    %34 = vector.extract_strided_slice %21 {offsets = [0, 64], sizes = [2, 32], strides = [1, 1]} : vector<2x128xf32> to vector<2x32xf32>
    %35 = math.tanh %34 : vector<2x32xf32>
    %36 = vector.extract_strided_slice %21 {offsets = [0, 96], sizes = [2, 32], strides = [1, 1]} : vector<2x128xf32> to vector<2x32xf32>
    %37 = arith.negf %36 : vector<2x32xf32>
    %38 = math.exp %37 : vector<2x32xf32>
    %cst_24 = arith.constant 1.000000e+00 : f32
    %39 = vector.broadcast %cst_24 : f32 to vector<2x32xf32>
    %40 = arith.addf %39, %38 : vector<2x32xf32>
    %41 = arith.divf %39, %40 : vector<2x32xf32>
    %42 = arith.mulf %33, %10 : vector<2x32xf32>
    %43 = arith.mulf %27, %35 : vector<2x32xf32>
    %44 = arith.addf %42, %43 : vector<2x32xf32>
    %45 = math.tanh %44 : vector<2x32xf32>
    %46 = arith.mulf %41, %45 : vector<2x32xf32>
    %47 = arith.truncf %46 : vector<2x32xf32> to vector<2x32xbf16>
    %cst_25 = arith.constant dense<0.000000e+00> : vector<2x128xf32>
    %48 = tpu.matmul %47, %4, %cst_25 {dimension_numbers = #tpu.dot_dimension_numbers<[1], [0], [0], [1], [0, 0, 1, 1], [], []>} : vector<2x32xbf16>, vector<32x128xbf16>, vector<2x128xf32> -> vector<2x128xf32>
    %49 = arith.truncf %12 : vector<2x32xf32> to vector<2x32xbf16>
    %cst_26 = arith.constant dense<0.000000e+00> : vector<2x128xf32>
    %50 = tpu.matmul %49, %5, %cst_26 {dimension_numbers = #tpu.dot_dimension_numbers<[1], [0], [0], [1], [0, 0, 1, 1], [], []>} : vector<2x32xbf16>, vector<32x128xbf16>, vector<2x128xf32> -> vector<2x128xf32>
    %51 = arith.addf %48, %50 : vector<2x128xf32>
    %52 = vector.broadcast %6 : vector<1x128xf32> to vector<2x128xf32>
    %53 = arith.addf %51, %52 : vector<2x128xf32>
    %54 = vector.extract_strided_slice %53 {offsets = [0, 0], sizes = [2, 32], strides = [1, 1]} : vector<2x128xf32> to vector<2x32xf32>
    %55 = arith.negf %54 : vector<2x32xf32>
    %56 = math.exp %55 : vector<2x32xf32>
    %cst_27 = arith.constant 1.000000e+00 : f32
    %57 = vector.broadcast %cst_27 : f32 to vector<2x32xf32>
    %58 = arith.addf %57, %56 : vector<2x32xf32>
    %59 = arith.divf %57, %58 : vector<2x32xf32>
    %60 = vector.extract_strided_slice %53 {offsets = [0, 32], sizes = [2, 32], strides = [1, 1]} : vector<2x128xf32> to vector<2x32xf32>
    %61 = arith.negf %60 : vector<2x32xf32>
    %62 = math.exp %61 : vector<2x32xf32>
    %cst_28 = arith.constant 1.000000e+00 : f32
    %63 = vector.broadcast %cst_28 : f32 to vector<2x32xf32>
    %64 = arith.addf %63, %62 : vector<2x32xf32>
    %65 = arith.divf %63, %64 : vector<2x32xf32>
    %66 = vector.extract_strided_slice %53 {offsets = [0, 64], sizes = [2, 32], strides = [1, 1]} : vector<2x128xf32> to vector<2x32xf32>
    %67 = math.tanh %66 : vector<2x32xf32>
    %68 = vector.extract_strided_slice %53 {offsets = [0, 96], sizes = [2, 32], strides = [1, 1]} : vector<2x128xf32> to vector<2x32xf32>
    %69 = arith.negf %68 : vector<2x32xf32>
    %70 = math.exp %69 : vector<2x32xf32>
    %cst_29 = arith.constant 1.000000e+00 : f32
    %71 = vector.broadcast %cst_29 : f32 to vector<2x32xf32>
    %72 = arith.addf %71, %70 : vector<2x32xf32>
    %73 = arith.divf %71, %72 : vector<2x32xf32>
    %74 = arith.mulf %65, %14 : vector<2x32xf32>
    %75 = arith.mulf %59, %67 : vector<2x32xf32>
    %76 = arith.addf %74, %75 : vector<2x32xf32>
    %77 = math.tanh %76 : vector<2x32xf32>
    %78 = arith.mulf %73, %77 : vector<2x32xf32>
    %79 = arith.truncf %78 : vector<2x32xf32> to vector<2x32xbf16>
    %80 = arith.index_cast %c0_i32_19 : i32 to index
    %c0_30 = arith.constant 0 : index
    %c0_31 = arith.constant 0 : index
    %81 = vector.load %arg9[%80, %c0_30, %c0_31] : memref<8x2x32xbf16, #tpu.memory_space<vmem>>, vector<1x2x32xbf16>
    %82 = vector.shape_cast %81 : vector<1x2x32xbf16> to vector<2x32xbf16>
    %83 = vector.shape_cast %79 : vector<2x32xbf16> to vector<1x2x32xbf16>
    tpu.vector_store %arg9[%80, %c0_30, %c0_31], %83 {strides = array<i32>} : memref<8x2x32xbf16, #tpu.memory_space<vmem>>, vector<1x2x32xbf16>,
    %c1_i32 = arith.constant 1 : i32
    %84 = arith.truncf %46 : vector<2x32xf32> to vector<2x32xbf16>
    %cst_32 = arith.constant dense<0.000000e+00> : vector<2x128xf32>
    %85 = tpu.matmul %84, %3, %cst_32 {dimension_numbers = #tpu.dot_dimension_numbers<[1], [0], [0], [1], [0, 0, 1, 1], [], []>} : vector<2x32xbf16>, vector<32x128xbf16>, vector<2x128xf32> -> vector<2x128xf32>
    %86 = arith.index_cast %c1_i32 : i32 to index
    %c0_33 = arith.constant 0 : index
    %c0_34 = arith.constant 0 : index
    %87 = vector.load %arg2[%86, %c0_33, %c0_34] : memref<8x2x128xbf16, #tpu.memory_space<vmem>>, vector<1x2x128xbf16>
    %88 = vector.shape_cast %87 : vector<1x2x128xbf16> to vector<2x128xbf16>
    %89 = arith.extf %88 : vector<2x128xbf16> to vector<2x128xf32>
    %90 = arith.addf %85, %89 : vector<2x128xf32>
    %91 = vector.extract_strided_slice %90 {offsets = [0, 0], sizes = [2, 32], strides = [1, 1]} : vector<2x128xf32> to vector<2x32xf32>
    %92 = arith.negf %91 : vector<2x32xf32>
    %93 = math.exp %92 : vector<2x32xf32>
    %cst_35 = arith.constant 1.000000e+00 : f32
    %94 = vector.broadcast %cst_35 : f32 to vector<2x32xf32>
    %95 = arith.addf %94, %93 : vector<2x32xf32>
    %96 = arith.divf %94, %95 : vector<2x32xf32>
    %97 = vector.extract_strided_slice %90 {offsets = [0, 32], sizes = [2, 32], strides = [1, 1]} : vector<2x128xf32> to vector<2x32xf32>
    %98 = arith.negf %97 : vector<2x32xf32>
    %99 = math.exp %98 : vector<2x32xf32>
    %cst_36 = arith.constant 1.000000e+00 : f32
    %100 = vector.broadcast %cst_36 : f32 to vector<2x32xf32>
    %101 = arith.addf %100, %99 : vector<2x32xf32>
    %102 = arith.divf %100, %101 : vector<2x32xf32>
    %103 = vector.extract_strided_slice %90 {offsets = [0, 64], sizes = [2, 32], strides = [1, 1]} : vector<2x128xf32> to vector<2x32xf32>
    %104 = math.tanh %103 : vector<2x32xf32>
    %105 = vector.extract_strided_slice %90 {offsets = [0, 96], sizes = [2, 32], strides = [1, 1]} : vector<2x128xf32> to vector<2x32xf32>
    %106 = arith.negf %105 : vector<2x32xf32>
    %107 = math.exp %106 : vector<2x32xf32>
    %cst_37 = arith.constant 1.000000e+00 : f32
    %108 = vector.broadcast %cst_37 : f32 to vector<2x32xf32>
    %109 = arith.addf %108, %107 : vector<2x32xf32>
    %110 = arith.divf %108, %109 : vector<2x32xf32>
    %111 = arith.mulf %102, %44 : vector<2x32xf32>
    %112 = arith.mulf %96, %104 : vector<2x32xf32>
    %113 = arith.addf %111, %112 : vector<2x32xf32>
    %114 = math.tanh %113 : vector<2x32xf32>
    %115 = arith.mulf %110, %114 : vector<2x32xf32>
    %116 = arith.truncf %115 : vector<2x32xf32> to vector<2x32xbf16>
    %cst_38 = arith.constant dense<0.000000e+00> : vector<2x128xf32>
    %117 = tpu.matmul %116, %4, %cst_38 {dimension_numbers = #tpu.dot_dimension_numbers<[1], [0], [0], [1], [0, 0, 1, 1], [], []>} : vector<2x32xbf16>, vector<32x128xbf16>, vector<2x128xf32> -> vector<2x128xf32>
    %118 = arith.truncf %78 : vector<2x32xf32> to vector<2x32xbf16>
    %cst_39 = arith.constant dense<0.000000e+00> : vector<2x128xf32>
    %119 = tpu.matmul %118, %5, %cst_39 {dimension_numbers = #tpu.dot_dimension_numbers<[1], [0], [0], [1], [0, 0, 1, 1], [], []>} : vector<2x32xbf16>, vector<32x128xbf16>, vector<2x128xf32> -> vector<2x128xf32>
    %120 = arith.addf %117, %119 : vector<2x128xf32>
    %121 = vector.broadcast %6 : vector<1x128xf32> to vector<2x128xf32>
    %122 = arith.addf %120, %121 : vector<2x128xf32>
    %123 = vector.extract_strided_slice %122 {offsets = [0, 0], sizes = [2, 32], strides = [1, 1]} : vector<2x128xf32> to vector<2x32xf32>
    %124 = arith.negf %123 : vector<2x32xf32>
    %125 = math.exp %124 : vector<2x32xf32>
    %cst_40 = arith.constant 1.000000e+00 : f32
    %126 = vector.broadcast %cst_40 : f32 to vector<2x32xf32>
    %127 = arith.addf %126, %125 : vector<2x32xf32>
    %128 = arith.divf %126, %127 : vector<2x32xf32>
    %129 = vector.extract_strided_slice %122 {offsets = [0, 32], sizes = [2, 32], strides = [1, 1]} : vector<2x128xf32> to vector<2x32xf32>
    %130 = arith.negf %129 : vector<2x32xf32>
    %131 = math.exp %130 : vector<2x32xf32>
    %cst_41 = arith.constant 1.000000e+00 : f32
    %132 = vector.broadcast %cst_41 : f32 to vector<2x32xf32>
    %133 = arith.addf %132, %131 : vector<2x32xf32>
    %134 = arith.divf %132, %133 : vector<2x32xf32>
    %135 = vector.extract_strided_slice %122 {offsets = [0, 64], sizes = [2, 32], strides = [1, 1]} : vector<2x128xf32> to vector<2x32xf32>
    %136 = math.tanh %135 : vector<2x32xf32>
    %137 = vector.extract_strided_slice %122 {offsets = [0, 96], sizes = [2, 32], strides = [1, 1]} : vector<2x128xf32> to vector<2x32xf32>
    %138 = arith.negf %137 : vector<2x32xf32>
    %139 = math.exp %138 : vector<2x32xf32>
    %cst_42 = arith.constant 1.000000e+00 : f32
    %140 = vector.broadcast %cst_42 : f32 to vector<2x32xf32>
    %141 = arith.addf %140, %139 : vector<2x32xf32>
    %142 = arith.divf %140, %141 : vector<2x32xf32>
    %143 = arith.mulf %134, %76 : vector<2x32xf32>
    %144 = arith.mulf %128, %136 : vector<2x32xf32>
    %145 = arith.addf %143, %144 : vector<2x32xf32>
    %146 = math.tanh %145 : vector<2x32xf32>
    %147 = arith.mulf %142, %146 : vector<2x32xf32>
    %148 = arith.truncf %147 : vector<2x32xf32> to vector<2x32xbf16>
    %149 = arith.index_cast %c1_i32 : i32 to index
    %c0_43 = arith.constant 0 : index
    %c0_44 = arith.constant 0 : index
    %150 = vector.load %arg9[%149, %c0_43, %c0_44] : memref<8x2x32xbf16, #tpu.memory_space<vmem>>, vector<1x2x32xbf16>
    %151 = vector.shape_cast %150 : vector<1x2x32xbf16> to vector<2x32xbf16>
    %152 = vector.shape_cast %148 : vector<2x32xbf16> to vector<1x2x32xbf16>
    tpu.vector_store %arg9[%149, %c0_43, %c0_44], %152 {strides = array<i32>} : memref<8x2x32xbf16, #tpu.memory_space<vmem>>, vector<1x2x32xbf16>,
    %c2_i32 = arith.constant 2 : i32
    %153 = arith.truncf %115 : vector<2x32xf32> to vector<2x32xbf16>
    %cst_45 = arith.constant dense<0.000000e+00> : vector<2x128xf32>
    %154 = tpu.matmul %153, %3, %cst_45 {dimension_numbers = #tpu.dot_dimension_numbers<[1], [0], [0], [1], [0, 0, 1, 1], [], []>} : vector<2x32xbf16>, vector<32x128xbf16>, vector<2x128xf32> -> vector<2x128xf32>
    %155 = arith.index_cast %c2_i32 : i32 to index
    %c0_46 = arith.constant 0 : index
    %c0_47 = arith.constant 0 : index
    %156 = vector.load %arg2[%155, %c0_46, %c0_47] : memref<8x2x128xbf16, #tpu.memory_space<vmem>>, vector<1x2x128xbf16>
    %157 = vector.shape_cast %156 : vector<1x2x128xbf16> to vector<2x128xbf16>
    %158 = arith.extf %157 : vector<2x128xbf16> to vector<2x128xf32>
    %159 = arith.addf %154, %158 : vector<2x128xf32>
    %160 = vector.extract_strided_slice %159 {offsets = [0, 0], sizes = [2, 32], strides = [1, 1]} : vector<2x128xf32> to vector<2x32xf32>
    %161 = arith.negf %160 : vector<2x32xf32>
    %162 = math.exp %161 : vector<2x32xf32>
    %cst_48 = arith.constant 1.000000e+00 : f32
    %163 = vector.broadcast %cst_48 : f32 to vector<2x32xf32>
    %164 = arith.addf %163, %162 : vector<2x32xf32>
    %165 = arith.divf %163, %164 : vector<2x32xf32>
    %166 = vector.extract_strided_slice %159 {offsets = [0, 32], sizes = [2, 32], strides = [1, 1]} : vector<2x128xf32> to vector<2x32xf32>
    %167 = arith.negf %166 : vector<2x32xf32>
    %168 = math.exp %167 : vector<2x32xf32>
    %cst_49 = arith.constant 1.000000e+00 : f32
    %169 = vector.broadcast %cst_49 : f32 to vector<2x32xf32>
    %170 = arith.addf %169, %168 : vector<2x32xf32>
    %171 = arith.divf %169, %170 : vector<2x32xf32>
    %172 = vector.extract_strided_slice %159 {offsets = [0, 64], sizes = [2, 32], strides = [1, 1]} : vector<2x128xf32> to vector<2x32xf32>
    %173 = math.tanh %172 : vector<2x32xf32>
    %174 = vector.extract_strided_slice %159 {offsets = [0, 96], sizes = [2, 32], strides = [1, 1]} : vector<2x128xf32> to vector<2x32xf32>
    %175 = arith.negf %174 : vector<2x32xf32>
    %176 = math.exp %175 : vector<2x32xf32>
    %cst_50 = arith.constant 1.000000e+00 : f32
    %177 = vector.broadcast %cst_50 : f32 to vector<2x32xf32>
    %178 = arith.addf %177, %176 : vector<2x32xf32>
    %179 = arith.divf %177, %178 : vector<2x32xf32>
    %180 = arith.mulf %171, %113 : vector<2x32xf32>
    %181 = arith.mulf %165, %173 : vector<2x32xf32>
    %182 = arith.addf %180, %181 : vector<2x32xf32>
    %183 = math.tanh %182 : vector<2x32xf32>
    %184 = arith.mulf %179, %183 : vector<2x32xf32>
    %185 = arith.truncf %184 : vector<2x32xf32> to vector<2x32xbf16>
    %cst_51 = arith.constant dense<0.000000e+00> : vector<2x128xf32>
    %186 = tpu.matmul %185, %4, %cst_51 {dimension_numbers = #tpu.dot_dimension_numbers<[1], [0], [0], [1], [0, 0, 1, 1], [], []>} : vector<2x32xbf16>, vector<32x128xbf16>, vector<2x128xf32> -> vector<2x128xf32>
    %187 = arith.truncf %147 : vector<2x32xf32> to vector<2x32xbf16>
    %cst_52 = arith.constant dense<0.000000e+00> : vector<2x128xf32>
    %188 = tpu.matmul %187, %5, %cst_52 {dimension_numbers = #tpu.dot_dimension_numbers<[1], [0], [0], [1], [0, 0, 1, 1], [], []>} : vector<2x32xbf16>, vector<32x128xbf16>, vector<2x128xf32> -> vector<2x128xf32>
    %189 = arith.addf %186, %188 : vector<2x128xf32>
    %190 = vector.broadcast %6 : vector<1x128xf32> to vector<2x128xf32>
    %191 = arith.addf %189, %190 : vector<2x128xf32>
    %192 = vector.extract_strided_slice %191 {offsets = [0, 0], sizes = [2, 32], strides = [1, 1]} : vector<2x128xf32> to vector<2x32xf32>
    %193 = arith.negf %192 : vector<2x32xf32>
    %194 = math.exp %193 : vector<2x32xf32>
    %cst_53 = arith.constant 1.000000e+00 : f32
    %195 = vector.broadcast %cst_53 : f32 to vector<2x32xf32>
    %196 = arith.addf %195, %194 : vector<2x32xf32>
    %197 = arith.divf %195, %196 : vector<2x32xf32>
    %198 = vector.extract_strided_slice %191 {offsets = [0, 32], sizes = [2, 32], strides = [1, 1]} : vector<2x128xf32> to vector<2x32xf32>
    %199 = arith.negf %198 : vector<2x32xf32>
    %200 = math.exp %199 : vector<2x32xf32>
    %cst_54 = arith.constant 1.000000e+00 : f32
    %201 = vector.broadcast %cst_54 : f32 to vector<2x32xf32>
    %202 = arith.addf %201, %200 : vector<2x32xf32>
    %203 = arith.divf %201, %202 : vector<2x32xf32>
    %204 = vector.extract_strided_slice %191 {offsets = [0, 64], sizes = [2, 32], strides = [1, 1]} : vector<2x128xf32> to vector<2x32xf32>
    %205 = math.tanh %204 : vector<2x32xf32>
    %206 = vector.extract_strided_slice %191 {offsets = [0, 96], sizes = [2, 32], strides = [1, 1]} : vector<2x128xf32> to vector<2x32xf32>
    %207 = arith.negf %206 : vector<2x32xf32>
    %208 = math.exp %207 : vector<2x32xf32>
    %cst_55 = arith.constant 1.000000e+00 : f32
    %209 = vector.broadcast %cst_55 : f32 to vector<2x32xf32>
    %210 = arith.addf %209, %208 : vector<2x32xf32>
    %211 = arith.divf %209, %210 : vector<2x32xf32>
    %212 = arith.mulf %203, %145 : vector<2x32xf32>
    %213 = arith.mulf %197, %205 : vector<2x32xf32>
    %214 = arith.addf %212, %213 : vector<2x32xf32>
    %215 = math.tanh %214 : vector<2x32xf32>
    %216 = arith.mulf %211, %215 : vector<2x32xf32>
    %217 = arith.truncf %216 : vector<2x32xf32> to vector<2x32xbf16>
    %218 = arith.index_cast %c2_i32 : i32 to index
    %c0_56 = arith.constant 0 : index
    %c0_57 = arith.constant 0 : index
    %219 = vector.load %arg9[%218, %c0_56, %c0_57] : memref<8x2x32xbf16, #tpu.memory_space<vmem>>, vector<1x2x32xbf16>
    %220 = vector.shape_cast %219 : vector<1x2x32xbf16> to vector<2x32xbf16>
    %221 = vector.shape_cast %217 : vector<2x32xbf16> to vector<1x2x32xbf16>
    tpu.vector_store %arg9[%218, %c0_56, %c0_57], %221 {strides = array<i32>} : memref<8x2x32xbf16, #tpu.memory_space<vmem>>, vector<1x2x32xbf16>,
    %c3_i32 = arith.constant 3 : i32
    %222 = arith.truncf %184 : vector<2x32xf32> to vector<2x32xbf16>
    %cst_58 = arith.constant dense<0.000000e+00> : vector<2x128xf32>
    %223 = tpu.matmul %222, %3, %cst_58 {dimension_numbers = #tpu.dot_dimension_numbers<[1], [0], [0], [1], [0, 0, 1, 1], [], []>} : vector<2x32xbf16>, vector<32x128xbf16>, vector<2x128xf32> -> vector<2x128xf32>
    %224 = arith.index_cast %c3_i32 : i32 to index
    %c0_59 = arith.constant 0 : index
    %c0_60 = arith.constant 0 : index
    %225 = vector.load %arg2[%224, %c0_59, %c0_60] : memref<8x2x128xbf16, #tpu.memory_space<vmem>>, vector<1x2x128xbf16>
    %226 = vector.shape_cast %225 : vector<1x2x128xbf16> to vector<2x128xbf16>
    %227 = arith.extf %226 : vector<2x128xbf16> to vector<2x128xf32>
    %228 = arith.addf %223, %227 : vector<2x128xf32>
    %229 = vector.extract_strided_slice %228 {offsets = [0, 0], sizes = [2, 32], strides = [1, 1]} : vector<2x128xf32> to vector<2x32xf32>
    %230 = arith.negf %229 : vector<2x32xf32>
    %231 = math.exp %230 : vector<2x32xf32>
    %cst_61 = arith.constant 1.000000e+00 : f32
    %232 = vector.broadcast %cst_61 : f32 to vector<2x32xf32>
    %233 = arith.addf %232, %231 : vector<2x32xf32>
    %234 = arith.divf %232, %233 : vector<2x32xf32>
    %235 = vector.extract_strided_slice %228 {offsets = [0, 32], sizes = [2, 32], strides = [1, 1]} : vector<2x128xf32> to vector<2x32xf32>
    %236 = arith.negf %235 : vector<2x32xf32>
    %237 = math.exp %236 : vector<2x32xf32>
    %cst_62 = arith.constant 1.000000e+00 : f32
    %238 = vector.broadcast %cst_62 : f32 to vector<2x32xf32>
    %239 = arith.addf %238, %237 : vector<2x32xf32>
    %240 = arith.divf %238, %239 : vector<2x32xf32>
    %241 = vector.extract_strided_slice %228 {offsets = [0, 64], sizes = [2, 32], strides = [1, 1]} : vector<2x128xf32> to vector<2x32xf32>
    %242 = math.tanh %241 : vector<2x32xf32>
    %243 = vector.extract_strided_slice %228 {offsets = [0, 96], sizes = [2, 32], strides = [1, 1]} : vector<2x128xf32> to vector<2x32xf32>
    %244 = arith.negf %243 : vector<2x32xf32>
    %245 = math.exp %244 : vector<2x32xf32>
    %cst_63 = arith.constant 1.000000e+00 : f32
    %246 = vector.broadcast %cst_63 : f32 to vector<2x32xf32>
    %247 = arith.addf %246, %245 : vector<2x32xf32>
    %248 = arith.divf %246, %247 : vector<2x32xf32>
    %249 = arith.mulf %240, %182 : vector<2x32xf32>
    %250 = arith.mulf %234, %242 : vector<2x32xf32>
    %251 = arith.addf %249, %250 : vector<2x32xf32>
    %252 = math.tanh %251 : vector<2x32xf32>
    %253 = arith.mulf %248, %252 : vector<2x32xf32>
    %254 = arith.truncf %253 : vector<2x32xf32> to vector<2x32xbf16>
    %cst_64 = arith.constant dense<0.000000e+00> : vector<2x128xf32>
    %255 = tpu.matmul %254, %4, %cst_64 {dimension_numbers = #tpu.dot_dimension_numbers<[1], [0], [0], [1], [0, 0, 1, 1], [], []>} : vector<2x32xbf16>, vector<32x128xbf16>, vector<2x128xf32> -> vector<2x128xf32>
    %256 = arith.truncf %216 : vector<2x32xf32> to vector<2x32xbf16>
    %cst_65 = arith.constant dense<0.000000e+00> : vector<2x128xf32>
    %257 = tpu.matmul %256, %5, %cst_65 {dimension_numbers = #tpu.dot_dimension_numbers<[1], [0], [0], [1], [0, 0, 1, 1], [], []>} : vector<2x32xbf16>, vector<32x128xbf16>, vector<2x128xf32> -> vector<2x128xf32>
    %258 = arith.addf %255, %257 : vector<2x128xf32>
    %259 = vector.broadcast %6 : vector<1x128xf32> to vector<2x128xf32>
    %260 = arith.addf %258, %259 : vector<2x128xf32>
    %261 = vector.extract_strided_slice %260 {offsets = [0, 0], sizes = [2, 32], strides = [1, 1]} : vector<2x128xf32> to vector<2x32xf32>
    %262 = arith.negf %261 : vector<2x32xf32>
    %263 = math.exp %262 : vector<2x32xf32>
    %cst_66 = arith.constant 1.000000e+00 : f32
    %264 = vector.broadcast %cst_66 : f32 to vector<2x32xf32>
    %265 = arith.addf %264, %263 : vector<2x32xf32>
    %266 = arith.divf %264, %265 : vector<2x32xf32>
    %267 = vector.extract_strided_slice %260 {offsets = [0, 32], sizes = [2, 32], strides = [1, 1]} : vector<2x128xf32> to vector<2x32xf32>
    %268 = arith.negf %267 : vector<2x32xf32>
    %269 = math.exp %268 : vector<2x32xf32>
    %cst_67 = arith.constant 1.000000e+00 : f32
    %270 = vector.broadcast %cst_67 : f32 to vector<2x32xf32>
    %271 = arith.addf %270, %269 : vector<2x32xf32>
    %272 = arith.divf %270, %271 : vector<2x32xf32>
    %273 = vector.extract_strided_slice %260 {offsets = [0, 64], sizes = [2, 32], strides = [1, 1]} : vector<2x128xf32> to vector<2x32xf32>
    %274 = math.tanh %273 : vector<2x32xf32>
    %275 = vector.extract_strided_slice %260 {offsets = [0, 96], sizes = [2, 32], strides = [1, 1]} : vector<2x128xf32> to vector<2x32xf32>
    %276 = arith.negf %275 : vector<2x32xf32>
    %277 = math.exp %276 : vector<2x32xf32>
    %cst_68 = arith.constant 1.000000e+00 : f32
    %278 = vector.broadcast %cst_68 : f32 to vector<2x32xf32>
    %279 = arith.addf %278, %277 : vector<2x32xf32>
    %280 = arith.divf %278, %279 : vector<2x32xf32>
    %281 = arith.mulf %272, %214 : vector<2x32xf32>
    %282 = arith.mulf %266, %274 : vector<2x32xf32>
    %283 = arith.addf %281, %282 : vector<2x32xf32>
    %284 = math.tanh %283 : vector<2x32xf32>
    %285 = arith.mulf %280, %284 : vector<2x32xf32>
    %286 = arith.truncf %285 : vector<2x32xf32> to vector<2x32xbf16>
    %287 = arith.index_cast %c3_i32 : i32 to index
    %c0_69 = arith.constant 0 : index
    %c0_70 = arith.constant 0 : index
    %288 = vector.load %arg9[%287, %c0_69, %c0_70] : memref<8x2x32xbf16, #tpu.memory_space<vmem>>, vector<1x2x32xbf16>
    %289 = vector.shape_cast %288 : vector<1x2x32xbf16> to vector<2x32xbf16>
    %290 = vector.shape_cast %286 : vector<2x32xbf16> to vector<1x2x32xbf16>
    tpu.vector_store %arg9[%287, %c0_69, %c0_70], %290 {strides = array<i32>} : memref<8x2x32xbf16, #tpu.memory_space<vmem>>, vector<1x2x32xbf16>,
    %c4_i32 = arith.constant 4 : i32
    %291 = arith.truncf %253 : vector<2x32xf32> to vector<2x32xbf16>
    %cst_71 = arith.constant dense<0.000000e+00> : vector<2x128xf32>
    %292 = tpu.matmul %291, %3, %cst_71 {dimension_numbers = #tpu.dot_dimension_numbers<[1], [0], [0], [1], [0, 0, 1, 1], [], []>} : vector<2x32xbf16>, vector<32x128xbf16>, vector<2x128xf32> -> vector<2x128xf32>
    %293 = arith.index_cast %c4_i32 : i32 to index
    %c0_72 = arith.constant 0 : index
    %c0_73 = arith.constant 0 : index
    %294 = vector.load %arg2[%293, %c0_72, %c0_73] : memref<8x2x128xbf16, #tpu.memory_space<vmem>>, vector<1x2x128xbf16>
    %295 = vector.shape_cast %294 : vector<1x2x128xbf16> to vector<2x128xbf16>
    %296 = arith.extf %295 : vector<2x128xbf16> to vector<2x128xf32>
    %297 = arith.addf %292, %296 : vector<2x128xf32>
    %298 = vector.extract_strided_slice %297 {offsets = [0, 0], sizes = [2, 32], strides = [1, 1]} : vector<2x128xf32> to vector<2x32xf32>
    %299 = arith.negf %298 : vector<2x32xf32>
    %300 = math.exp %299 : vector<2x32xf32>
    %cst_74 = arith.constant 1.000000e+00 : f32
    %301 = vector.broadcast %cst_74 : f32 to vector<2x32xf32>
    %302 = arith.addf %301, %300 : vector<2x32xf32>
    %303 = arith.divf %301, %302 : vector<2x32xf32>
    %304 = vector.extract_strided_slice %297 {offsets = [0, 32], sizes = [2, 32], strides = [1, 1]} : vector<2x128xf32> to vector<2x32xf32>
    %305 = arith.negf %304 : vector<2x32xf32>
    %306 = math.exp %305 : vector<2x32xf32>
    %cst_75 = arith.constant 1.000000e+00 : f32
    %307 = vector.broadcast %cst_75 : f32 to vector<2x32xf32>
    %308 = arith.addf %307, %306 : vector<2x32xf32>
    %309 = arith.divf %307, %308 : vector<2x32xf32>
    %310 = vector.extract_strided_slice %297 {offsets = [0, 64], sizes = [2, 32], strides = [1, 1]} : vector<2x128xf32> to vector<2x32xf32>
    %311 = math.tanh %310 : vector<2x32xf32>
    %312 = vector.extract_strided_slice %297 {offsets = [0, 96], sizes = [2, 32], strides = [1, 1]} : vector<2x128xf32> to vector<2x32xf32>
    %313 = arith.negf %312 : vector<2x32xf32>
    %314 = math.exp %313 : vector<2x32xf32>
    %cst_76 = arith.constant 1.000000e+00 : f32
    %315 = vector.broadcast %cst_76 : f32 to vector<2x32xf32>
    %316 = arith.addf %315, %314 : vector<2x32xf32>
    %317 = arith.divf %315, %316 : vector<2x32xf32>
    %318 = arith.mulf %309, %251 : vector<2x32xf32>
    %319 = arith.mulf %303, %311 : vector<2x32xf32>
    %320 = arith.addf %318, %319 : vector<2x32xf32>
    %321 = math.tanh %320 : vector<2x32xf32>
    %322 = arith.mulf %317, %321 : vector<2x32xf32>
    %323 = arith.truncf %322 : vector<2x32xf32> to vector<2x32xbf16>
    %cst_77 = arith.constant dense<0.000000e+00> : vector<2x128xf32>
    %324 = tpu.matmul %323, %4, %cst_77 {dimension_numbers = #tpu.dot_dimension_numbers<[1], [0], [0], [1], [0, 0, 1, 1], [], []>} : vector<2x32xbf16>, vector<32x128xbf16>, vector<2x128xf32> -> vector<2x128xf32>
    %325 = arith.truncf %285 : vector<2x32xf32> to vector<2x32xbf16>
    %cst_78 = arith.constant dense<0.000000e+00> : vector<2x128xf32>
    %326 = tpu.matmul %325, %5, %cst_78 {dimension_numbers = #tpu.dot_dimension_numbers<[1], [0], [0], [1], [0, 0, 1, 1], [], []>} : vector<2x32xbf16>, vector<32x128xbf16>, vector<2x128xf32> -> vector<2x128xf32>
    %327 = arith.addf %324, %326 : vector<2x128xf32>
    %328 = vector.broadcast %6 : vector<1x128xf32> to vector<2x128xf32>
    %329 = arith.addf %327, %328 : vector<2x128xf32>
    %330 = vector.extract_strided_slice %329 {offsets = [0, 0], sizes = [2, 32], strides = [1, 1]} : vector<2x128xf32> to vector<2x32xf32>
    %331 = arith.negf %330 : vector<2x32xf32>
    %332 = math.exp %331 : vector<2x32xf32>
    %cst_79 = arith.constant 1.000000e+00 : f32
    %333 = vector.broadcast %cst_79 : f32 to vector<2x32xf32>
    %334 = arith.addf %333, %332 : vector<2x32xf32>
    %335 = arith.divf %333, %334 : vector<2x32xf32>
    %336 = vector.extract_strided_slice %329 {offsets = [0, 32], sizes = [2, 32], strides = [1, 1]} : vector<2x128xf32> to vector<2x32xf32>
    %337 = arith.negf %336 : vector<2x32xf32>
    %338 = math.exp %337 : vector<2x32xf32>
    %cst_80 = arith.constant 1.000000e+00 : f32
    %339 = vector.broadcast %cst_80 : f32 to vector<2x32xf32>
    %340 = arith.addf %339, %338 : vector<2x32xf32>
    %341 = arith.divf %339, %340 : vector<2x32xf32>
    %342 = vector.extract_strided_slice %329 {offsets = [0, 64], sizes = [2, 32], strides = [1, 1]} : vector<2x128xf32> to vector<2x32xf32>
    %343 = math.tanh %342 : vector<2x32xf32>
    %344 = vector.extract_strided_slice %329 {offsets = [0, 96], sizes = [2, 32], strides = [1, 1]} : vector<2x128xf32> to vector<2x32xf32>
    %345 = arith.negf %344 : vector<2x32xf32>
    %346 = math.exp %345 : vector<2x32xf32>
    %cst_81 = arith.constant 1.000000e+00 : f32
    %347 = vector.broadcast %cst_81 : f32 to vector<2x32xf32>
    %348 = arith.addf %347, %346 : vector<2x32xf32>
    %349 = arith.divf %347, %348 : vector<2x32xf32>
    %350 = arith.mulf %341, %283 : vector<2x32xf32>
    %351 = arith.mulf %335, %343 : vector<2x32xf32>
    %352 = arith.addf %350, %351 : vector<2x32xf32>
    %353 = math.tanh %352 : vector<2x32xf32>
    %354 = arith.mulf %349, %353 : vector<2x32xf32>
    %355 = arith.truncf %354 : vector<2x32xf32> to vector<2x32xbf16>
    %356 = arith.index_cast %c4_i32 : i32 to index
    %c0_82 = arith.constant 0 : index
    %c0_83 = arith.constant 0 : index
    %357 = vector.load %arg9[%356, %c0_82, %c0_83] : memref<8x2x32xbf16, #tpu.memory_space<vmem>>, vector<1x2x32xbf16>
    %358 = vector.shape_cast %357 : vector<1x2x32xbf16> to vector<2x32xbf16>
    %359 = vector.shape_cast %355 : vector<2x32xbf16> to vector<1x2x32xbf16>
    tpu.vector_store %arg9[%356, %c0_82, %c0_83], %359 {strides = array<i32>} : memref<8x2x32xbf16, #tpu.memory_space<vmem>>, vector<1x2x32xbf16>,
    %c5_i32 = arith.constant 5 : i32
    %360 = arith.truncf %322 : vector<2x32xf32> to vector<2x32xbf16>
    %cst_84 = arith.constant dense<0.000000e+00> : vector<2x128xf32>
    %361 = tpu.matmul %360, %3, %cst_84 {dimension_numbers = #tpu.dot_dimension_numbers<[1], [0], [0], [1], [0, 0, 1, 1], [], []>} : vector<2x32xbf16>, vector<32x128xbf16>, vector<2x128xf32> -> vector<2x128xf32>
    %362 = arith.index_cast %c5_i32 : i32 to index
    %c0_85 = arith.constant 0 : index
    %c0_86 = arith.constant 0 : index
    %363 = vector.load %arg2[%362, %c0_85, %c0_86] : memref<8x2x128xbf16, #tpu.memory_space<vmem>>, vector<1x2x128xbf16>
    %364 = vector.shape_cast %363 : vector<1x2x128xbf16> to vector<2x128xbf16>
    %365 = arith.extf %364 : vector<2x128xbf16> to vector<2x128xf32>
    %366 = arith.addf %361, %365 : vector<2x128xf32>
    %367 = vector.extract_strided_slice %366 {offsets = [0, 0], sizes = [2, 32], strides = [1, 1]} : vector<2x128xf32> to vector<2x32xf32>
    %368 = arith.negf %367 : vector<2x32xf32>
    %369 = math.exp %368 : vector<2x32xf32>
    %cst_87 = arith.constant 1.000000e+00 : f32
    %370 = vector.broadcast %cst_87 : f32 to vector<2x32xf32>
    %371 = arith.addf %370, %369 : vector<2x32xf32>
    %372 = arith.divf %370, %371 : vector<2x32xf32>
    %373 = vector.extract_strided_slice %366 {offsets = [0, 32], sizes = [2, 32], strides = [1, 1]} : vector<2x128xf32> to vector<2x32xf32>
    %374 = arith.negf %373 : vector<2x32xf32>
    %375 = math.exp %374 : vector<2x32xf32>
    %cst_88 = arith.constant 1.000000e+00 : f32
    %376 = vector.broadcast %cst_88 : f32 to vector<2x32xf32>
    %377 = arith.addf %376, %375 : vector<2x32xf32>
    %378 = arith.divf %376, %377 : vector<2x32xf32>
    %379 = vector.extract_strided_slice %366 {offsets = [0, 64], sizes = [2, 32], strides = [1, 1]} : vector<2x128xf32> to vector<2x32xf32>
    %380 = math.tanh %379 : vector<2x32xf32>
    %381 = vector.extract_strided_slice %366 {offsets = [0, 96], sizes = [2, 32], strides = [1, 1]} : vector<2x128xf32> to vector<2x32xf32>
    %382 = arith.negf %381 : vector<2x32xf32>
    %383 = math.exp %382 : vector<2x32xf32>
    %cst_89 = arith.constant 1.000000e+00 : f32
    %384 = vector.broadcast %cst_89 : f32 to vector<2x32xf32>
    %385 = arith.addf %384, %383 : vector<2x32xf32>
    %386 = arith.divf %384, %385 : vector<2x32xf32>
    %387 = arith.mulf %378, %320 : vector<2x32xf32>
    %388 = arith.mulf %372, %380 : vector<2x32xf32>
    %389 = arith.addf %387, %388 : vector<2x32xf32>
    %390 = math.tanh %389 : vector<2x32xf32>
    %391 = arith.mulf %386, %390 : vector<2x32xf32>
    %392 = arith.truncf %391 : vector<2x32xf32> to vector<2x32xbf16>
    %cst_90 = arith.constant dense<0.000000e+00> : vector<2x128xf32>
    %393 = tpu.matmul %392, %4, %cst_90 {dimension_numbers = #tpu.dot_dimension_numbers<[1], [0], [0], [1], [0, 0, 1, 1], [], []>} : vector<2x32xbf16>, vector<32x128xbf16>, vector<2x128xf32> -> vector<2x128xf32>
    %394 = arith.truncf %354 : vector<2x32xf32> to vector<2x32xbf16>
    %cst_91 = arith.constant dense<0.000000e+00> : vector<2x128xf32>
    %395 = tpu.matmul %394, %5, %cst_91 {dimension_numbers = #tpu.dot_dimension_numbers<[1], [0], [0], [1], [0, 0, 1, 1], [], []>} : vector<2x32xbf16>, vector<32x128xbf16>, vector<2x128xf32> -> vector<2x128xf32>
    %396 = arith.addf %393, %395 : vector<2x128xf32>
    %397 = vector.broadcast %6 : vector<1x128xf32> to vector<2x128xf32>
    %398 = arith.addf %396, %397 : vector<2x128xf32>
    %399 = vector.extract_strided_slice %398 {offsets = [0, 0], sizes = [2, 32], strides = [1, 1]} : vector<2x128xf32> to vector<2x32xf32>
    %400 = arith.negf %399 : vector<2x32xf32>
    %401 = math.exp %400 : vector<2x32xf32>
    %cst_92 = arith.constant 1.000000e+00 : f32
    %402 = vector.broadcast %cst_92 : f32 to vector<2x32xf32>
    %403 = arith.addf %402, %401 : vector<2x32xf32>
    %404 = arith.divf %402, %403 : vector<2x32xf32>
    %405 = vector.extract_strided_slice %398 {offsets = [0, 32], sizes = [2, 32], strides = [1, 1]} : vector<2x128xf32> to vector<2x32xf32>
    %406 = arith.negf %405 : vector<2x32xf32>
    %407 = math.exp %406 : vector<2x32xf32>
    %cst_93 = arith.constant 1.000000e+00 : f32
    %408 = vector.broadcast %cst_93 : f32 to vector<2x32xf32>
    %409 = arith.addf %408, %407 : vector<2x32xf32>
    %410 = arith.divf %408, %409 : vector<2x32xf32>
    %411 = vector.extract_strided_slice %398 {offsets = [0, 64], sizes = [2, 32], strides = [1, 1]} : vector<2x128xf32> to vector<2x32xf32>
    %412 = math.tanh %411 : vector<2x32xf32>
    %413 = vector.extract_strided_slice %398 {offsets = [0, 96], sizes = [2, 32], strides = [1, 1]} : vector<2x128xf32> to vector<2x32xf32>
    %414 = arith.negf %413 : vector<2x32xf32>
    %415 = math.exp %414 : vector<2x32xf32>
    %cst_94 = arith.constant 1.000000e+00 : f32
    %416 = vector.broadcast %cst_94 : f32 to vector<2x32xf32>
    %417 = arith.addf %416, %415 : vector<2x32xf32>
    %418 = arith.divf %416, %417 : vector<2x32xf32>
    %419 = arith.mulf %410, %352 : vector<2x32xf32>
    %420 = arith.mulf %404, %412 : vector<2x32xf32>
    %421 = arith.addf %419, %420 : vector<2x32xf32>
    %422 = math.tanh %421 : vector<2x32xf32>
    %423 = arith.mulf %418, %422 : vector<2x32xf32>
    %424 = arith.truncf %423 : vector<2x32xf32> to vector<2x32xbf16>
    %425 = arith.index_cast %c5_i32 : i32 to index
    %c0_95 = arith.constant 0 : index
    %c0_96 = arith.constant 0 : index
    %426 = vector.load %arg9[%425, %c0_95, %c0_96] : memref<8x2x32xbf16, #tpu.memory_space<vmem>>, vector<1x2x32xbf16>
    %427 = vector.shape_cast %426 : vector<1x2x32xbf16> to vector<2x32xbf16>
    %428 = vector.shape_cast %424 : vector<2x32xbf16> to vector<1x2x32xbf16>
    tpu.vector_store %arg9[%425, %c0_95, %c0_96], %428 {strides = array<i32>} : memref<8x2x32xbf16, #tpu.memory_space<vmem>>, vector<1x2x32xbf16>,
    %c6_i32 = arith.constant 6 : i32
    %429 = arith.truncf %391 : vector<2x32xf32> to vector<2x32xbf16>
    %cst_97 = arith.constant dense<0.000000e+00> : vector<2x128xf32>
    %430 = tpu.matmul %429, %3, %cst_97 {dimension_numbers = #tpu.dot_dimension_numbers<[1], [0], [0], [1], [0, 0, 1, 1], [], []>} : vector<2x32xbf16>, vector<32x128xbf16>, vector<2x128xf32> -> vector<2x128xf32>
    %431 = arith.index_cast %c6_i32 : i32 to index
    %c0_98 = arith.constant 0 : index
    %c0_99 = arith.constant 0 : index
    %432 = vector.load %arg2[%431, %c0_98, %c0_99] : memref<8x2x128xbf16, #tpu.memory_space<vmem>>, vector<1x2x128xbf16>
    %433 = vector.shape_cast %432 : vector<1x2x128xbf16> to vector<2x128xbf16>
    %434 = arith.extf %433 : vector<2x128xbf16> to vector<2x128xf32>
    %435 = arith.addf %430, %434 : vector<2x128xf32>
    %436 = vector.extract_strided_slice %435 {offsets = [0, 0], sizes = [2, 32], strides = [1, 1]} : vector<2x128xf32> to vector<2x32xf32>
    %437 = arith.negf %436 : vector<2x32xf32>
    %438 = math.exp %437 : vector<2x32xf32>
    %cst_100 = arith.constant 1.000000e+00 : f32
    %439 = vector.broadcast %cst_100 : f32 to vector<2x32xf32>
    %440 = arith.addf %439, %438 : vector<2x32xf32>
    %441 = arith.divf %439, %440 : vector<2x32xf32>
    %442 = vector.extract_strided_slice %435 {offsets = [0, 32], sizes = [2, 32], strides = [1, 1]} : vector<2x128xf32> to vector<2x32xf32>
    %443 = arith.negf %442 : vector<2x32xf32>
    %444 = math.exp %443 : vector<2x32xf32>
    %cst_101 = arith.constant 1.000000e+00 : f32
    %445 = vector.broadcast %cst_101 : f32 to vector<2x32xf32>
    %446 = arith.addf %445, %444 : vector<2x32xf32>
    %447 = arith.divf %445, %446 : vector<2x32xf32>
    %448 = vector.extract_strided_slice %435 {offsets = [0, 64], sizes = [2, 32], strides = [1, 1]} : vector<2x128xf32> to vector<2x32xf32>
    %449 = math.tanh %448 : vector<2x32xf32>
    %450 = vector.extract_strided_slice %435 {offsets = [0, 96], sizes = [2, 32], strides = [1, 1]} : vector<2x128xf32> to vector<2x32xf32>
    %451 = arith.negf %450 : vector<2x32xf32>
    %452 = math.exp %451 : vector<2x32xf32>
    %cst_102 = arith.constant 1.000000e+00 : f32
    %453 = vector.broadcast %cst_102 : f32 to vector<2x32xf32>
    %454 = arith.addf %453, %452 : vector<2x32xf32>
    %455 = arith.divf %453, %454 : vector<2x32xf32>
    %456 = arith.mulf %447, %389 : vector<2x32xf32>
    %457 = arith.mulf %441, %449 : vector<2x32xf32>
    %458 = arith.addf %456, %457 : vector<2x32xf32>
    %459 = math.tanh %458 : vector<2x32xf32>
    %460 = arith.mulf %455, %459 : vector<2x32xf32>
    %461 = arith.truncf %460 : vector<2x32xf32> to vector<2x32xbf16>
    %cst_103 = arith.constant dense<0.000000e+00> : vector<2x128xf32>
    %462 = tpu.matmul %461, %4, %cst_103 {dimension_numbers = #tpu.dot_dimension_numbers<[1], [0], [0], [1], [0, 0, 1, 1], [], []>} : vector<2x32xbf16>, vector<32x128xbf16>, vector<2x128xf32> -> vector<2x128xf32>
    %463 = arith.truncf %423 : vector<2x32xf32> to vector<2x32xbf16>
    %cst_104 = arith.constant dense<0.000000e+00> : vector<2x128xf32>
    %464 = tpu.matmul %463, %5, %cst_104 {dimension_numbers = #tpu.dot_dimension_numbers<[1], [0], [0], [1], [0, 0, 1, 1], [], []>} : vector<2x32xbf16>, vector<32x128xbf16>, vector<2x128xf32> -> vector<2x128xf32>
    %465 = arith.addf %462, %464 : vector<2x128xf32>
    %466 = vector.broadcast %6 : vector<1x128xf32> to vector<2x128xf32>
    %467 = arith.addf %465, %466 : vector<2x128xf32>
    %468 = vector.extract_strided_slice %467 {offsets = [0, 0], sizes = [2, 32], strides = [1, 1]} : vector<2x128xf32> to vector<2x32xf32>
    %469 = arith.negf %468 : vector<2x32xf32>
    %470 = math.exp %469 : vector<2x32xf32>
    %cst_105 = arith.constant 1.000000e+00 : f32
    %471 = vector.broadcast %cst_105 : f32 to vector<2x32xf32>
    %472 = arith.addf %471, %470 : vector<2x32xf32>
    %473 = arith.divf %471, %472 : vector<2x32xf32>
    %474 = vector.extract_strided_slice %467 {offsets = [0, 32], sizes = [2, 32], strides = [1, 1]} : vector<2x128xf32> to vector<2x32xf32>
    %475 = arith.negf %474 : vector<2x32xf32>
    %476 = math.exp %475 : vector<2x32xf32>
    %cst_106 = arith.constant 1.000000e+00 : f32
    %477 = vector.broadcast %cst_106 : f32 to vector<2x32xf32>
    %478 = arith.addf %477, %476 : vector<2x32xf32>
    %479 = arith.divf %477, %478 : vector<2x32xf32>
    %480 = vector.extract_strided_slice %467 {offsets = [0, 64], sizes = [2, 32], strides = [1, 1]} : vector<2x128xf32> to vector<2x32xf32>
    %481 = math.tanh %480 : vector<2x32xf32>
    %482 = vector.extract_strided_slice %467 {offsets = [0, 96], sizes = [2, 32], strides = [1, 1]} : vector<2x128xf32> to vector<2x32xf32>
    %483 = arith.negf %482 : vector<2x32xf32>
    %484 = math.exp %483 : vector<2x32xf32>
    %cst_107 = arith.constant 1.000000e+00 : f32
    %485 = vector.broadcast %cst_107 : f32 to vector<2x32xf32>
    %486 = arith.addf %485, %484 : vector<2x32xf32>
    %487 = arith.divf %485, %486 : vector<2x32xf32>
    %488 = arith.mulf %479, %421 : vector<2x32xf32>
    %489 = arith.mulf %473, %481 : vector<2x32xf32>
    %490 = arith.addf %488, %489 : vector<2x32xf32>
    %491 = math.tanh %490 : vector<2x32xf32>
    %492 = arith.mulf %487, %491 : vector<2x32xf32>
    %493 = arith.truncf %492 : vector<2x32xf32> to vector<2x32xbf16>
    %494 = arith.index_cast %c6_i32 : i32 to index
    %c0_108 = arith.constant 0 : index
    %c0_109 = arith.constant 0 : index
    %495 = vector.load %arg9[%494, %c0_108, %c0_109] : memref<8x2x32xbf16, #tpu.memory_space<vmem>>, vector<1x2x32xbf16>
    %496 = vector.shape_cast %495 : vector<1x2x32xbf16> to vector<2x32xbf16>
    %497 = vector.shape_cast %493 : vector<2x32xbf16> to vector<1x2x32xbf16>
    tpu.vector_store %arg9[%494, %c0_108, %c0_109], %497 {strides = array<i32>} : memref<8x2x32xbf16, #tpu.memory_space<vmem>>, vector<1x2x32xbf16>,
    %c7_i32 = arith.constant 7 : i32
    %498 = arith.truncf %460 : vector<2x32xf32> to vector<2x32xbf16>
    %cst_110 = arith.constant dense<0.000000e+00> : vector<2x128xf32>
    %499 = tpu.matmul %498, %3, %cst_110 {dimension_numbers = #tpu.dot_dimension_numbers<[1], [0], [0], [1], [0, 0, 1, 1], [], []>} : vector<2x32xbf16>, vector<32x128xbf16>, vector<2x128xf32> -> vector<2x128xf32>
    %500 = arith.index_cast %c7_i32 : i32 to index
    %c0_111 = arith.constant 0 : index
    %c0_112 = arith.constant 0 : index
    %501 = vector.load %arg2[%500, %c0_111, %c0_112] : memref<8x2x128xbf16, #tpu.memory_space<vmem>>, vector<1x2x128xbf16>
    %502 = vector.shape_cast %501 : vector<1x2x128xbf16> to vector<2x128xbf16>
    %503 = arith.extf %502 : vector<2x128xbf16> to vector<2x128xf32>
    %504 = arith.addf %499, %503 : vector<2x128xf32>
    %505 = vector.extract_strided_slice %504 {offsets = [0, 0], sizes = [2, 32], strides = [1, 1]} : vector<2x128xf32> to vector<2x32xf32>
    %506 = arith.negf %505 : vector<2x32xf32>
    %507 = math.exp %506 : vector<2x32xf32>
    %cst_113 = arith.constant 1.000000e+00 : f32
    %508 = vector.broadcast %cst_113 : f32 to vector<2x32xf32>
    %509 = arith.addf %508, %507 : vector<2x32xf32>
    %510 = arith.divf %508, %509 : vector<2x32xf32>
    %511 = vector.extract_strided_slice %504 {offsets = [0, 32], sizes = [2, 32], strides = [1, 1]} : vector<2x128xf32> to vector<2x32xf32>
    %512 = arith.negf %511 : vector<2x32xf32>
    %513 = math.exp %512 : vector<2x32xf32>
    %cst_114 = arith.constant 1.000000e+00 : f32
    %514 = vector.broadcast %cst_114 : f32 to vector<2x32xf32>
    %515 = arith.addf %514, %513 : vector<2x32xf32>
    %516 = arith.divf %514, %515 : vector<2x32xf32>
    %517 = vector.extract_strided_slice %504 {offsets = [0, 64], sizes = [2, 32], strides = [1, 1]} : vector<2x128xf32> to vector<2x32xf32>
    %518 = math.tanh %517 : vector<2x32xf32>
    %519 = vector.extract_strided_slice %504 {offsets = [0, 96], sizes = [2, 32], strides = [1, 1]} : vector<2x128xf32> to vector<2x32xf32>
    %520 = arith.negf %519 : vector<2x32xf32>
    %521 = math.exp %520 : vector<2x32xf32>
    %cst_115 = arith.constant 1.000000e+00 : f32
    %522 = vector.broadcast %cst_115 : f32 to vector<2x32xf32>
    %523 = arith.addf %522, %521 : vector<2x32xf32>
    %524 = arith.divf %522, %523 : vector<2x32xf32>
    %525 = arith.mulf %516, %458 : vector<2x32xf32>
    %526 = arith.mulf %510, %518 : vector<2x32xf32>
    %527 = arith.addf %525, %526 : vector<2x32xf32>
    %528 = math.tanh %527 : vector<2x32xf32>
    %529 = arith.mulf %524, %528 : vector<2x32xf32>
    %530 = arith.truncf %529 : vector<2x32xf32> to vector<2x32xbf16>
    %cst_116 = arith.constant dense<0.000000e+00> : vector<2x128xf32>
    %531 = tpu.matmul %530, %4, %cst_116 {dimension_numbers = #tpu.dot_dimension_numbers<[1], [0], [0], [1], [0, 0, 1, 1], [], []>} : vector<2x32xbf16>, vector<32x128xbf16>, vector<2x128xf32> -> vector<2x128xf32>
    %532 = arith.truncf %492 : vector<2x32xf32> to vector<2x32xbf16>
    %cst_117 = arith.constant dense<0.000000e+00> : vector<2x128xf32>
    %533 = tpu.matmul %532, %5, %cst_117 {dimension_numbers = #tpu.dot_dimension_numbers<[1], [0], [0], [1], [0, 0, 1, 1], [], []>} : vector<2x32xbf16>, vector<32x128xbf16>, vector<2x128xf32> -> vector<2x128xf32>
    %534 = arith.addf %531, %533 : vector<2x128xf32>
    %535 = vector.broadcast %6 : vector<1x128xf32> to vector<2x128xf32>
    %536 = arith.addf %534, %535 : vector<2x128xf32>
    %537 = vector.extract_strided_slice %536 {offsets = [0, 0], sizes = [2, 32], strides = [1, 1]} : vector<2x128xf32> to vector<2x32xf32>
    %538 = arith.negf %537 : vector<2x32xf32>
    %539 = math.exp %538 : vector<2x32xf32>
    %cst_118 = arith.constant 1.000000e+00 : f32
    %540 = vector.broadcast %cst_118 : f32 to vector<2x32xf32>
    %541 = arith.addf %540, %539 : vector<2x32xf32>
    %542 = arith.divf %540, %541 : vector<2x32xf32>
    %543 = vector.extract_strided_slice %536 {offsets = [0, 32], sizes = [2, 32], strides = [1, 1]} : vector<2x128xf32> to vector<2x32xf32>
    %544 = arith.negf %543 : vector<2x32xf32>
    %545 = math.exp %544 : vector<2x32xf32>
    %cst_119 = arith.constant 1.000000e+00 : f32
    %546 = vector.broadcast %cst_119 : f32 to vector<2x32xf32>
    %547 = arith.addf %546, %545 : vector<2x32xf32>
    %548 = arith.divf %546, %547 : vector<2x32xf32>
    %549 = vector.extract_strided_slice %536 {offsets = [0, 64], sizes = [2, 32], strides = [1, 1]} : vector<2x128xf32> to vector<2x32xf32>
    %550 = math.tanh %549 : vector<2x32xf32>
    %551 = vector.extract_strided_slice %536 {offsets = [0, 96], sizes = [2, 32], strides = [1, 1]} : vector<2x128xf32> to vector<2x32xf32>
    %552 = arith.negf %551 : vector<2x32xf32>
    %553 = math.exp %552 : vector<2x32xf32>
    %cst_120 = arith.constant 1.000000e+00 : f32
    %554 = vector.broadcast %cst_120 : f32 to vector<2x32xf32>
    %555 = arith.addf %554, %553 : vector<2x32xf32>
    %556 = arith.divf %554, %555 : vector<2x32xf32>
    %557 = arith.mulf %548, %490 : vector<2x32xf32>
    %558 = arith.mulf %542, %550 : vector<2x32xf32>
    %559 = arith.addf %557, %558 : vector<2x32xf32>
    %560 = math.tanh %559 : vector<2x32xf32>
    %561 = arith.mulf %556, %560 : vector<2x32xf32>
    %562 = arith.truncf %561 : vector<2x32xf32> to vector<2x32xbf16>
    %563 = arith.index_cast %c7_i32 : i32 to index
    %c0_121 = arith.constant 0 : index
    %c0_122 = arith.constant 0 : index
    %564 = vector.load %arg9[%563, %c0_121, %c0_122] : memref<8x2x32xbf16, #tpu.memory_space<vmem>>, vector<1x2x32xbf16>
    %565 = vector.shape_cast %564 : vector<1x2x32xbf16> to vector<2x32xbf16>
    %566 = vector.shape_cast %562 : vector<2x32xbf16> to vector<1x2x32xbf16>
    tpu.vector_store %arg9[%563, %c0_121, %c0_122], %566 {strides = array<i32>} : memref<8x2x32xbf16, #tpu.memory_space<vmem>>, vector<1x2x32xbf16>,
    %c8_i32 = arith.constant 8 : i32
    %c0_123 = arith.constant 0 : index
    %c0_124 = arith.constant 0 : index
    %c0_125 = arith.constant 0 : index
    %567 = vector.load %arg10[%c0_123, %c0_124, %c0_125] : memref<2x2x32xf32, #tpu.memory_space<vmem>>, vector<1x2x32xf32>
    %568 = vector.shape_cast %567 : vector<1x2x32xf32> to vector<2x32xf32>
    %569 = vector.shape_cast %529 : vector<2x32xf32> to vector<1x2x32xf32>
    tpu.vector_store %arg10[%c0_123, %c0_124, %c0_125], %569 {strides = array<i32>} : memref<2x2x32xf32, #tpu.memory_space<vmem>>, vector<1x2x32xf32>,
    %c1_126 = arith.constant 1 : index
    %c0_127 = arith.constant 0 : index
    %c0_128 = arith.constant 0 : index
    %570 = vector.load %arg10[%c1_126, %c0_127, %c0_128] : memref<2x2x32xf32, #tpu.memory_space<vmem>>, vector<1x2x32xf32>
    %571 = vector.shape_cast %570 : vector<1x2x32xf32> to vector<2x32xf32>
    %572 = vector.shape_cast %561 : vector<2x32xf32> to vector<1x2x32xf32>
    tpu.vector_store %arg10[%c1_126, %c0_127, %c0_128], %572 {strides = array<i32>} : memref<2x2x32xf32, #tpu.memory_space<vmem>>, vector<1x2x32xf32>,
    %c0_129 = arith.constant 0 : index
    %c0_130 = arith.constant 0 : index
    %c0_131 = arith.constant 0 : index
    %573 = vector.load %arg11[%c0_129, %c0_130, %c0_131] : memref<2x2x32xf32, #tpu.memory_space<vmem>>, vector<1x2x32xf32>
    %574 = vector.shape_cast %573 : vector<1x2x32xf32> to vector<2x32xf32>
    %575 = vector.shape_cast %527 : vector<2x32xf32> to vector<1x2x32xf32>
    tpu.vector_store %arg11[%c0_129, %c0_130, %c0_131], %575 {strides = array<i32>} : memref<2x2x32xf32, #tpu.memory_space<vmem>>, vector<1x2x32xf32>,
    %c1_132 = arith.constant 1 : index
    %c0_133 = arith.constant 0 : index
    %c0_134 = arith.constant 0 : index
    %576 = vector.load %arg11[%c1_132, %c0_133, %c0_134] : memref<2x2x32xf32, #tpu.memory_space<vmem>>, vector<1x2x32xf32>
    %577 = vector.shape_cast %576 : vector<1x2x32xf32> to vector<2x32xf32>
    %578 = vector.shape_cast %559 : vector<2x32xf32> to vector<1x2x32xf32>
    tpu.vector_store %arg11[%c1_132, %c0_133, %c0_134], %578 {strides = array<i32>} : memref<2x2x32xf32, #tpu.memory_space<vmem>>, vector<1x2x32xf32>,
    return
  }
  func.func @transform_0(%arg0: i32, %arg1: i32) -> (i32, i32, i32) {
    %c0_i32 = arith.constant 0 : i32
    %c0_i32_0 = arith.constant 0 : i32
    return %arg1, %arg0, %c0_i32 : i32, i32, i32
  }
  func.func @transform_1(%arg0: i32, %arg1: i32) -> (i32, i32, i32) {
    %c0_i32 = arith.constant 0 : i32
    %c0_i32_0 = arith.constant 0 : i32
    %c0_i32_1 = arith.constant 0 : i32
    return %c0_i32, %arg0, %c0_i32_0 : i32, i32, i32
  }
  func.func @transform_2(%arg0: i32, %arg1: i32) -> (i32, i32, i32) {
    %c0_i32 = arith.constant 0 : i32
    %c0_i32_0 = arith.constant 0 : i32
    %c0_i32_1 = arith.constant 0 : i32
    return %c0_i32, %arg0, %c0_i32_0 : i32, i32, i32
  }
  func.func @transform_3(%arg0: i32, %arg1: i32) -> (i32, i32) {
    %c0_i32 = arith.constant 0 : i32
    %c0_i32_0 = arith.constant 0 : i32
    %c0_i32_1 = arith.constant 0 : i32
    return %c0_i32, %c0_i32_0 : i32, i32
  }
  func.func @transform_4(%arg0: i32, %arg1: i32) -> (i32, i32) {
    %c0_i32 = arith.constant 0 : i32
    %c0_i32_0 = arith.constant 0 : i32
    %c0_i32_1 = arith.constant 0 : i32
    return %c0_i32, %c0_i32_0 : i32, i32
  }
  func.func @transform_5(%arg0: i32, %arg1: i32) -> (i32, i32) {
    %c0_i32 = arith.constant 0 : i32
    %c0_i32_0 = arith.constant 0 : i32
    %c0_i32_1 = arith.constant 0 : i32
    return %c0_i32, %c0_i32_0 : i32, i32
  }
  func.func @transform_6(%arg0: i32, %arg1: i32) -> (i32, i32) {
    %c0_i32 = arith.constant 0 : i32
    %c0_i32_0 = arith.constant 0 : i32
    %c0_i32_1 = arith.constant 0 : i32
    return %c0_i32, %c0_i32_0 : i32, i32
  }
  func.func @transform_7(%arg0: i32, %arg1: i32) -> (i32, i32, i32) {
    %c0_i32 = arith.constant 0 : i32
    %c0_i32_0 = arith.constant 0 : i32
    return %arg1, %arg0, %c0_i32 : i32, i32, i32
  }
  func.func @transform_8(%arg0: i32, %arg1: i32) -> (i32, i32, i32) {
    %c0_i32 = arith.constant 0 : i32
    %c0_i32_0 = arith.constant 0 : i32
    %c0_i32_1 = arith.constant 0 : i32
    return %c0_i32, %arg0, %c0_i32_0 : i32, i32, i32
  }
  func.func @transform_9(%arg0: i32, %arg1: i32) -> (i32, i32, i32) {
    %c0_i32 = arith.constant 0 : i32
    %c0_i32_0 = arith.constant 0 : i32
    %c0_i32_1 = arith.constant 0 : i32
    return %c0_i32, %arg0, %c0_i32_0 : i32, i32, i32
  }
}

</mosaic_0001>

<bundles_post_ra>
// kernel: mymodel_forward.3
= control target key start
LH: loop header
LB: loop body
LE: loop exit
PB: predicated region body
PF: predicated region fallthrough
CT: control target
= control target key end

     0   :  { %v121_v0 = vmov 0.0   ;;  %vm122_vm0 = vmmov 0   ;;  %vm37_vm1 = vcmask 130048   ;;  %s155_s1 = inlined_call_operand.vmem [shape: bf16[16,128], index: 1, kind: input, shape index: {}]   ;;  %s156_s0 = inlined_call_operand.vmem [shape: bf16[16,16], index: 0, kind: input, shape index: {}]   ;;  %s157_s2 = inlined_call_operand.vmem [shape: f32[1,128], index: 2, kind: input, shape index: {}]   ;;  %s158_s3 = inlined_call_operand.vmem [shape: bf16[16,128], index: 3, kind: output, shape index: {}]  }
   0x1   :  { %111 = vmatprep.subr.bf16.mxu0 %v121_v0  ;;  %v119_v1 = vld [vmem:[%s155_s1] sm:$0xff]   ;;  %113 = vmatprep.mubr.msk.bf16.mxu0 %vm122_vm0, %v121_v0 }
   0x2   :  { %v120_v2 = vld [vmem:[%s156_s0] sm:$0xff]   ;;  %112 = vmatpush3.bf16.msra.mxu0 %v119_v1 }
   0x3   :  { %v96_v3 = vld [vmem:[%s157_s2] ss:$0 sm:$0xff] }
   0x5   :  { %114 = vmatmul.mubr.msk.bf16.vlgmr.msra.gmra.mrb[0].mxu0 %vm37_vm1, %v120_v2 }
  0xd8   :  { %v75_v4 = vpop.f32.mrb[0].mxu0 }
  0xd9   :  { %v115_v5 = vpop.f32.mrb[1].mxu0  ;;  %v76_v7 = vadd.f32 %v96_v3, %v75_v4 }
  0xda   :  { %v78_v6 = vpop.f32.mrb[2].mxu0 }
  0xdb   :  { %v79_v8 = vadd.f32 %v96_v3, %v78_v6  ;;  %v116_v9 = vpop.f32.mrb[3].mxu0 }
  0xdd   :  { %v107_v10 = vpack.c.bf16 %v79_v8, %v76_v7 }
  0xdf   :  { %108 = vst [vmem:[%s158_s3] sm:$0xff] %v107_v10  }

// kernel: mymodel_forward.5
= control target key start
LH: loop header
LB: loop body
LE: loop exit
PB: predicated region body
PF: predicated region fallthrough
CT: control target
= control target key end

     0   :  { %v158_v1 = vmov 0.0   ;;  %vm159_vm0 = vmmov 0   ;;  %s207_s0 = inlined_call_operand.vmem [shape: bf16[16,32], index: 0, kind: input, shape index: {}]   ;;  %s208_s1 = inlined_call_operand.vmem [shape: bf16[32,64], index: 1, kind: input, shape index: {}]   ;;  %s209_s2 = inlined_call_operand.vmem [shape: f32[1,64], index: 2, kind: input, shape index: {}]   ;;  %s210_s3 = inlined_call_operand.hbm [shape: f32[16,64], index: 3, kind: output, shape index: {}]  }
   0x1   :  { %v131_v0 = vld [vmem:[%s208_s1] sm:$0xff]   ;;  %118 = vmatprep.subr.bf16.mxu0 %v158_v1  ;;  %v132_v2 = vld [vmem:[%s208_s1 + $0x8] sm:$0xff]   ;;  %122 = vmatprep.mubr.msk.bf16.mxu0 %vm159_vm0, %v158_v1 }
   0x2   :  { %119 = vmatpush3.bf16.msra.mxu0 %v131_v0 }
   0x3   :  { %120 = vmatprep.subr.bf16.mxu0 %v158_v1 }
   0x4   :  { %8 = vsyncpa [#allocation3], 0  ;;  %v133_v3 = vld [vmem:[%s207_s0] sm:$0xff]   ;;  %vm46_vm1 = vcmask 261120   ;;  %s160_s20 = smov [#allocation2]   ;;  %vm91_vm2 = vcmask 523264  }
   0x5   :  { %v110_v4 = vld [vmem:[%s209_s2] ss:$0 sm:$0xff]  ;;  %s99_s21 = sshll.u32 %s160_s20, 4  ;;  %s100_s21 = int_to_ptr.vmem [resolvable:$true] %s99_s21 }
   0x6   :  { %121 = vmatpush3.bf16.msra.mxu0 %v132_v2  ;;  %s134_s0 = scalar_lea.vmem %s100_s21, 256  ;;  %p139_p1 = scmp.lt.s32.totalorder %s100_s21, %s100_s21 }
   0x7   :  { %p135_p0 = scmp.ne.s32.totalorder %s100_s21, %s134_s0  ;;  %p140_p2 = scmp.lt.s32.totalorder %s134_s0, %s134_s0 }
   0x9   :  { %123 = vmatmul.mubr.msk.bf16.vlgmr.msra.gmra.mrb[0].mxu0 %vm46_vm1, %v133_v3  ;;  %p141_p3 = por %p140_p2, %p139_p1 }
   0xb   :  { %p142_p4 = pnand %p141_p3, %p135_p0 }
  0xdc   :  { %v84_v5 = vpop.f32.mrb[0].mxu0 }
  0xdd   :  { %v85_v6 = vadd.f32 %v110_v4, %v84_v5  ;;  %v124_v7 = vpop.f32.mrb[1].mxu0 }
  0xde   :  { %v87_v8 = vpop.f32.mrb[2].mxu0 }
  0xdf   :  { %92 = vst.msk [vmem:[#allocation2] sm:$0xff] %vm91_vm2, %v85_v6  ;;  %v88_v9 = vadd.f32 %v110_v4, %v87_v8  ;;  %v125_v10 = vpop.f32.mrb[3].mxu0 }
  0xe1   :  { %93 = vst.msk [vmem:[#allocation2 + $0x8] sm:$0xff] %vm91_vm2, %v88_v9 }
  0xe2   :  { %145 = shalt.err (!%p142_p4)
}
  0xe3   :  { %s146_s22 = scalar_lea.hbm %s210_s3, 256 }
  0xe4   :  { %p147_p5 = scmp.ne.s32.totalorder %s210_s3, %s146_s22  ;;  %p150_p6 = scmp.lt.u32.totalorder %s146_s22, %s210_s3 }
  0xe6   :  { %p152_p7 = pnand %p150_p6, %p147_p5 }
  0xe8   :  { %155 = shalt.err (!%p152_p7)
}
  0xe9   :  { %s161_s27 = smov 128   ;;  %s162_s28 = smov 8  }
  0xea   :  { %105 = dma.vmem_to_hbm [thread:$0]  %s100_s21, 256, %s210_s3, [#allocation3], %s161_s27, %s161_s27, %s162_s28  }
  0xeb   :  { %156 = dma.done.wait [#allocation3], 256  }
  0xec   :  { %157 = vsyncadd [#allocation3], 4294967040 }
  0xed   :  { %109 = vsyncpa [#allocation3], 1 }

// kernel: mymodel_forward.4
= control target key start
LH: loop header
LB: loop body
LE: loop exit
PB: predicated region body
PF: predicated region fallthrough
CT: control target
= control target key end

     0   :  { %15 = vsyncpa [#allocation3], 0  ;;  %v2337_v1 = vmov 0.0   ;;  %vm2338_vm0 = vmmov 0   ;;  %vm38_vm1 = vcmask 254976   ;;  %s2900_s0 = inlined_call_operand.vmem [shape: bf16[8,2,128], index: 0, kind: input, shape index: {}]   ;;  %s2901_s1 = inlined_call_operand.vmem [shape: f32[2,2,32], index: 1, kind: input, shape index: {}, may-alias: {1,2}]   ;;  %s2902_s2 = inlined_call_operand.vmem [shape: f32[2,2,32], index: 2, kind: input, shape index: {}, may-alias: {1,2}]   ;;  %s2903_s3 = inlined_call_operand.vmem [shape: bf16[32,128], index: 3, kind: input, shape index: {}]   ;;  %s2904_s4 = inlined_call_operand.vmem [shape: bf16[32,128], index: 4, kind: input, shape index: {}]   ;;  %s2905_s5 = inlined_call_operand.vmem [shape: bf16[32,128], index: 5, kind: input, shape index: {}]   ;;  %s2906_s6 = inlined_call_operand.vmem [shape: f32[1,128], index: 6, kind: input, shape index: {}]   ;;  %s2907_s7 = inlined_call_operand.vmem [shape: bf16[8,2,32], index: 7, kind: output, shape index: {0}]   ;;  %s2908_s8 = inlined_call_operand.hbm [shape: f32[2,2,32], index: 8, kind: output, shape index: {1}]   ;;  %s2909_s9 = inlined_call_operand.hbm [shape: f32[2,2,32], index: 9, kind: output, shape index: {2}]  }
   0x1   :  { %v2399_v0 = vld [vmem:[%s2903_s3] sm:$0xff]   ;;  %1947 = vmatprep.subr.bf16.mxu0 %v2337_v1  ;;  %1955 = vmatprep.subr.bf16.mxu1 %v2337_v1  ;;  %v2407_v2 = vld [vmem:[%s2903_s3 + $0x8] sm:$0xff]  }
   0x2   :  { %1948 = vmatpush3.bf16.msra.mxu0 %v2399_v0  ;;  %1951 = vmatprep.mubr.msk.bf16.mxu0 %vm2338_vm0, %v2337_v1  ;;  %v36_v3 = vld [vmem:[%s2901_s1] sm:$0x3] }
   0x3   :  { %1949 = vmatprep.subr.bf16.mxu0 %v2337_v1  ;;  %39 = vst.msk [vmem:[#allocation2] sm:$0x3] %vm38_vm1, %v36_v3  ;;  %1959 = vmatprep.mubr.msk.bf16.mxu1 %vm2338_vm0, %v2337_v1 }
   0x4   :  { %16 = vsyncpa [#allocation5], 0  ;;  %vm79_vm2 = vcmask 261120   ;;  %v41_v6 = vld [vmem:[%s2902_s2] sm:$0x3]  ;;  %s2339_s19 = smov 64  }
   0x5   :  { %43 = vst.msk [vmem:[#allocation4] sm:$0x3] %vm38_vm1, %v41_v6  ;;  %v65_v7 = vld [vmem:[%s2900_s0] sm:$0x1]  ;;  %s2340_s20 = smov 32   ;;  %v2454_v29 = vld [vmem:[%s2905_s5 + $0x8] sm:$0xff]  }
   0x6   :  { %1950 = vmatpush3.bf16.msra.mxu0 %v2407_v2  ;;  %v66_v8 = vunpack.c.l.bf16 %v65_v7  ;;  %v2439_v26 = vld [vmem:[%s2905_s5] sm:$0xff]   ;;  %v2461_v30 = vld [vmem:[%s2904_s4 + $0x8] sm:$0xff]   ;;  %vm320_vm3 = vcmask 253952   ;;  %s2343_s24 = smov [#allocation4]  }
   0x7   :  { %1963 = vmatprep.subr.bf16.mxu0 %v2337_v1  ;;  %v37_v27 = vld [vmem:[%s2901_s1 + $0x2] sm:$0x3]  ;;  %1956 = vmatpush3.bf16.msra.mxu1 %v2439_v26  ;;  %v1826_v43 = vld [vmem:[%s2900_s0 + $0x1] sm:$0x1]  ;;  %v2501_v45 = vld [vmem:[%s2906_s6] ss:$0 sm:$0xff] }
   0x8   :  { %40 = vst.msk [vmem:[#allocation2 + $0x2] sm:$0x3] %vm38_vm1, %v37_v27  ;;  %v2448_v28 = vld [vmem:[%s2904_s4] sm:$0xff]   ;;  %1957 = vmatprep.subr.bf16.mxu1 %v2337_v1  ;;  %v324_v44 = vunpack.c.l.bf16 %v1826_v43  ;;  %s1797_s25 = sshll.u32 %s2343_s24, 4  ;;  %s1798_s25 = int_to_ptr.vmem [resolvable:$true] %s1797_s25 }
   0x9   :  { %v42_v42 = vld [vmem:[%s2902_s2 + $0x2] sm:$0x3]  ;;  %s2289_s26 = scalar_lea.vmem %s1798_s25, 64  ;;  %p2294_p1 = scmp.lt.s32.totalorder %s1798_s25, %s1798_s25 }
   0xa   :  { %v58_v4 = vld [vmem:[#allocation2] sm:$0x3]  ;;  %44 = vst.msk [vmem:[#allocation4 + $0x2] sm:$0x3] %vm38_vm1, %v42_v42  ;;  %p2290_p0 = scmp.ne.s32.totalorder %s1798_s25, %s2289_s26  ;;  %p2295_p2 = scmp.lt.s32.totalorder %s2289_s26, %s2289_s26 }
   0xb   :  { %v64_v5 = vpack.c.bf16 %v58_v4, %v58_v4  ;;  %1958 = vmatpush3.bf16.msra.mxu1 %v2454_v29 }
   0xc   :  { %v59_v15 = vld [vmem:[#allocation4] sm:$0x3]  ;;  %1971 = vmatprep.subr.bf16.mxu1 %v2337_v1  ;;  %p2296_p3 = por %p2295_p2, %p2294_p1 }
   0xd   :  { %1952 = vmatmul.mubr.msk.bf16.vlgmr.msra.gmra.mrb[0].mxu0 %vm79_vm2, %v64_v5 }
   0xe   :  { %1967 = vmatprep.mubr.msk.bf16.mxu0 %vm2338_vm0, %v2337_v1  ;;  %1964 = vmatpush3.bf16.msra.mxu0 %v2448_v28  ;;  %p2297_p4 = pnand %p2296_p3, %p2290_p0 }
   0xf   :  { %1965 = vmatprep.subr.bf16.mxu0 %v2337_v1  ;;  %v61_v32 = vld [vmem:[#allocation2 + $0x2] sm:$0x3] }
  0x10   :  { %v152_v33 = vpack.c.bf16 %v61_v32, %v61_v32 }
  0x11   :  { %v63_v59 = vld [vmem:[#allocation4 + $0x2] sm:$0x3] }
  0x12   :  { %1966 = vmatpush3.bf16.msra.mxu0 %v2461_v30  ;;  %1960 = vmatmul.mubr.msk.bf16.vlgmr.msra.gmra.mrb[0].mxu1 %vm79_vm2, %v152_v33 }
  0x13   :  { %1979 = vmatprep.subr.bf16.mxu0 %v2337_v1  ;;  %1972 = vmatpush3.bf16.msra.mxu1 %v2399_v0 }
  0x14   :  { %1975 = vmatprep.mubr.msk.bf16.mxu1 %vm2338_vm0, %v2337_v1  ;;  %1973 = vmatprep.subr.bf16.mxu1 %v2337_v1 }
  0x17   :  { %1974 = vmatpush3.bf16.msra.mxu1 %v2407_v2 }
  0x18   :  { %1987 = vmatprep.subr.bf16.mxu1 %v2337_v1 }
  0xe0   :  { %v117_v9 = vpop.f32.mrb[0].mxu0 }
  0xe1   :  { %v118_v10 = vadd.f32 %v117_v9, %v66_v8  ;;  %v1953_v11 = vpop.f32.mrb[1].mxu0 }
  0xe2   :  { %v120_v12 = vpop.f32.mrb[2].mxu0 }
  0xe3   :  { %2154 = vtanh.f32 %v118_v10  ;;  %v1954_v13 = vpop.f32.mrb[3].mxu0  ;;  %v1817_v16 = vmul.f32 -1.442695, %v118_v10 }
  0xe5   :  { %2156 = vpow2.f32 %v1817_v16  ;;  %v202_v37 = vpop.f32.mrb[0].mxu1 }
  0xe6   :  { %v1961_v38 = vpop.f32.mrb[1].mxu1 }
  0xe7   :  { %v205_v39 = vpop.f32.mrb[2].mxu1 }
  0xe8   :  { %v1962_v40 = vpop.f32.mrb[3].mxu1 }
  0xe9   :  { %v1833_v40 = vld [vmem:[%s2900_s0 + $0x2] sm:$0x1] }
  0xea   :  { %v529_v43 = vunpack.c.l.bf16 %v1833_v40 }
  0xed   :  { %v2155_v14 = vpop.eup %2154 }
  0xee   :  { %136 = vrot.lane.b32.xlu0 %v2155_v14, %s2339_s19 }
  0xef   :  { %v2157_v17 = vpop.eup %2156 }
  0xf0   :  { %v126_v18 = vadd.f32 1.0, %v2157_v17 }
  0xf2   :  { %131 = vrot.lane.b32.xlu0 %v59_v15, %s2340_s20  ;;  %2158 = vrcp.f32 %v126_v18 }
  0xfc   :  { %v2159_v19 = vpop.eup %2158 }
 0x160   :  { %v137_v20 = vpop.permute.xlu0 %136 }
 0x161   :  { %v139_v21 = vmul.f32 %v2159_v19, %v137_v20 }
 0x163   :  { %141 = vrot.lane.b32.xlu1 %v139_v21, %s2340_s20 }
 0x164   :  { %v132_v22 = vpop.permute.xlu0 %131 }
 0x165   :  { %v134_v23 = vmul.f32 %v2159_v19, %v132_v22 }
 0x1d5   :  { %v142_v24 = vpop.permute.xlu1 %141 }
 0x1d6   :  { %v2433_v25 = vadd.f32 %v142_v24, %v134_v23 }
 0x1d8   :  { %2160 = vtanh.f32 %v2433_v25 }
 0x1e2   :  { %v2161_v31 = vpop.eup %2160 }
 0x1e3   :  { %147 = vrot.lane.b32.xlu1 %v2161_v31, %s2339_s19 }
 0x255   :  { %v148_v34 = vpop.permute.xlu1 %147 }
 0x256   :  { %v150_v35 = vmul.f32 %v2159_v19, %v148_v34 }
 0x258   :  { %v151_v36 = vpack.c.bf16 %v150_v35, %v150_v35 }
 0x25a   :  { %209 = vrot.lane.b32.xlu0 %v151_v36, %s2340_s20 }
 0x2cc   :  { %v210_v41 = vpop.permute.xlu0 %209 }
 0x2cd   :  { %1968 = vmatmul.mubr.msk.bf16.vlgmr.msra.gmra.mrb[4].mxu0 %vm79_vm2, %v210_v41  ;;  %1976 = vmatmul.mubr.msk.bf16.vlgmr.msra.gmra.mrb[4].mxu1 %vm79_vm2, %v210_v41 }
 0x2ce   :  { %1988 = vmatpush3.bf16.msra.mxu1 %v2448_v28  ;;  %1980 = vmatpush3.bf16.msra.mxu0 %v2439_v26 }
 0x2cf   :  { %1989 = vmatprep.subr.bf16.mxu1 %v2337_v1  ;;  %1981 = vmatprep.subr.bf16.mxu0 %v2337_v1 }
 0x2d0   :  { %1991 = vmatprep.mubr.msk.bf16.mxu1 %vm2338_vm0, %v2337_v1  ;;  %1983 = vmatprep.mubr.msk.bf16.mxu0 %vm2338_vm0, %v2337_v1 }
 0x2d2   :  { %1990 = vmatpush3.bf16.msra.mxu1 %v2461_v30  ;;  %1982 = vmatpush3.bf16.msra.mxu0 %v2454_v29 }
 0x2d3   :  { %1995 = vmatprep.subr.bf16.mxu0 %v2337_v1  ;;  %2003 = vmatprep.subr.bf16.mxu1 %v2337_v1 }
 0x3a0   :  { %v260_v46 = vpop.f32.mrb[4].mxu0  ;;  %v359_v47 = vpop.f32.mrb[4].mxu1 }
 0x3a1   :  { %v261_v48 = vadd.f32 %v260_v46, %v202_v37  ;;  %v360_v49 = vadd.f32 %v359_v47, %v324_v44  ;;  %v1969_v50 = vpop.f32.mrb[5].mxu0  ;;  %v1977_v51 = vpop.f32.mrb[5].mxu1 }
 0x3a2   :  { %v263_v52 = vpop.f32.mrb[6].mxu0  ;;  %v362_v53 = vpop.f32.mrb[6].mxu1 }
 0x3a3   :  { %v272_v54 = vadd.f32 %v2501_v45, %v261_v48  ;;  %2162 = vtanh.f32 %v360_v49  ;;  %v1970_v55 = vpop.f32.mrb[7].mxu0  ;;  %v1978_v56 = vpop.f32.mrb[7].mxu1  ;;  %v1828_v60 = vmul.f32 -1.442695, %v360_v49 }
 0x3a5   :  { %2164 = vtanh.f32 %v272_v54  ;;  %v1825_v61 = vmul.f32 -1.442695, %v272_v54 }
 0x3a6   :  { %2166 = vpow2.f32 %v1828_v60 }
 0x3a7   :  { %2168 = vpow2.f32 %v1825_v61 }
 0x3ad   :  { %v2163_v57 = vpop.eup %2162 }
 0x3ae   :  { %374 = vrot.lane.b32.xlu0 %v2163_v57, %s2339_s19 }
 0x3af   :  { %v2165_v58 = vpop.eup %2164 }
 0x3b0   :  { %286 = vrot.lane.b32.xlu1 %v2165_v58, %s2339_s19  ;;  %v2167_v62 = vpop.eup %2166 }
 0x3b1   :  { %v2169_v63 = vpop.eup %2168  ;;  %v368_v3 = vadd.f32 1.0, %v2167_v62 }
 0x3b2   :  { %v276_v4 = vadd.f32 1.0, %v2169_v63 }
 0x3b3   :  { %2170 = vrcp.f32 %v368_v3 }
 0x3b4   :  { %281 = vrot.lane.b32.xlu1 %v63_v59, %s2340_s20  ;;  %2172 = vrcp.f32 %v276_v4 }
 0x3bd   :  { %v2171_v5 = vpop.eup %2170 }
 0x3be   :  { %v2173_v8 = vpop.eup %2172  ;;  %v372_v12 = vmul.f32 %v2171_v5, %v2433_v25 }
 0x420   :  { %v375_v6 = vpop.permute.xlu0 %374 }
 0x421   :  { %v377_v7 = vmul.f32 %v2171_v5, %v375_v6 }
 0x422   :  { %v287_v9 = vpop.permute.xlu1 %286 }
 0x423   :  { %v289_v10 = vmul.f32 %v2173_v8, %v287_v9  ;;  %379 = vrot.lane.b32.xlu1 %v377_v7, %s2340_s20 }
 0x425   :  { %291 = vrot.lane.b32.xlu0 %v289_v10, %s2340_s20 }
 0x426   :  { %v282_v11 = vpop.permute.xlu1 %281 }
 0x427   :  { %v284_v14 = vmul.f32 %v2173_v8, %v282_v11 }
 0x495   :  { %v380_v13 = vpop.permute.xlu1 %379 }
 0x496   :  { %v2510_v15 = vadd.f32 %v380_v13, %v372_v12 }
 0x497   :  { %v292_v16 = vpop.permute.xlu0 %291 }
 0x498   :  { %2174 = vtanh.f32 %v2510_v15  ;;  %v2513_v17 = vadd.f32 %v292_v16, %v284_v14 }
 0x49a   :  { %2176 = vtanh.f32 %v2513_v17 }
 0x4a2   :  { %v2175_v18 = vpop.eup %2174 }
 0x4a3   :  { %385 = vrot.lane.b32.xlu1 %v2175_v18, %s2339_s19 }
 0x4a4   :  { %v2177_v19 = vpop.eup %2176 }
 0x4a5   :  { %297 = vrot.lane.b32.xlu0 %v2177_v19, %s2339_s19 }
 0x515   :  { %v386_v20 = vpop.permute.xlu1 %385 }
 0x516   :  { %v388_v21 = vmul.f32 %v2171_v5, %v386_v20 }
 0x517   :  { %v298_v22 = vpop.permute.xlu0 %297 }
 0x518   :  { %v389_v23 = vpack.c.bf16 %v388_v21, %v388_v21  ;;  %v300_v24 = vmul.f32 %v2173_v8, %v298_v22  ;;  %v1840_v22 = vld [vmem:[%s2900_s0 + $0x3] sm:$0x1] }
 0x51a   :  { %v2518_v25 = vpack.c.bf16 %v300_v24, %v300_v24  ;;  %436 = vrot.lane.b32.xlu1 %v389_v23, %s2340_s20  ;;  %v734_v24 = vunpack.c.l.bf16 %v1840_v22 }
 0x51c   :  { %390 = vrot.lane.b32.xlu0 %v2518_v25, %s2340_s20 }
 0x58c   :  { %v437_v27 = vpop.permute.xlu1 %436 }
 0x58d   :  { %1992 = vmatmul.mubr.msk.bf16.vlgmr.msra.gmra.mrb[8].mxu1 %vm79_vm2, %v437_v27 }
 0x58e   :  { %v391_v31 = vpop.permute.xlu0 %390  ;;  %2004 = vmatpush3.bf16.msra.mxu1 %v2439_v26  ;;  %2007 = vmatprep.mubr.msk.bf16.mxu1 %vm2338_vm0, %v2337_v1 }
 0x58f   :  { %1984 = vmatmul.mubr.msk.bf16.vlgmr.msra.gmra.mrb[8].mxu0 %vm79_vm2, %v391_v31  ;;  %2005 = vmatprep.subr.bf16.mxu1 %v2337_v1 }
 0x590   :  { %1996 = vmatpush3.bf16.msra.mxu0 %v2399_v0  ;;  %1999 = vmatprep.mubr.msk.bf16.mxu0 %vm2338_vm0, %v2337_v1 }
 0x591   :  { %1997 = vmatprep.subr.bf16.mxu0 %v2337_v1 }
 0x592   :  { %2006 = vmatpush3.bf16.msra.mxu1 %v2454_v29 }
 0x593   :  { %2019 = vmatprep.subr.bf16.mxu1 %v2337_v1 }
 0x594   :  { %1998 = vmatpush3.bf16.msra.mxu0 %v2407_v2 }
 0x595   :  { %2011 = vmatprep.subr.bf16.mxu0 %v2337_v1 }
 0x597   :  { %2000 = vmatmul.mubr.msk.bf16.vlgmr.msra.gmra.mrb[12].mxu0 %vm79_vm2, %v437_v27 }
 0x598   :  { %2012 = vmatpush3.bf16.msra.mxu0 %v2448_v28  ;;  %2015 = vmatprep.mubr.msk.bf16.mxu0 %vm2338_vm0, %v2337_v1 }
 0x599   :  { %2013 = vmatprep.subr.bf16.mxu0 %v2337_v1 }
 0x59c   :  { %2014 = vmatpush3.bf16.msra.mxu0 %v2461_v30 }
 0x59d   :  { %2027 = vmatprep.subr.bf16.mxu0 %v2337_v1 }
 0x660   :  { %v475_v32 = vpop.f32.mrb[8].mxu1 }
 0x661   :  { %v1993_v33 = vpop.f32.mrb[9].mxu1 }
 0x662   :  { %v429_v34 = vpop.f32.mrb[8].mxu0  ;;  %v478_v35 = vpop.f32.mrb[10].mxu1 }
 0x663   :  { %v476_v36 = vadd.f32 %v475_v32, %v429_v34  ;;  %v1985_v37 = vpop.f32.mrb[9].mxu0  ;;  %v1994_v38 = vpop.f32.mrb[11].mxu1 }
 0x664   :  { %v432_v39 = vpop.f32.mrb[10].mxu0 }
 0x665   :  { %v481_v41 = vadd.f32 %v2501_v45, %v476_v36  ;;  %v1986_v42 = vpop.f32.mrb[11].mxu0 }
 0x667   :  { %2178 = vtanh.f32 %v481_v41  ;;  %v1831_v52 = vmul.f32 -1.442695, %v481_v41 }
 0x66a   :  { %v564_v44 = vpop.f32.mrb[12].mxu0 }
 0x66b   :  { %v565_v46 = vadd.f32 %v564_v44, %v529_v43  ;;  %v2001_v47 = vpop.f32.mrb[13].mxu0 }
 0x66c   :  { %v567_v48 = vpop.f32.mrb[14].mxu0 }
 0x66d   :  { %2180 = vtanh.f32 %v565_v46  ;;  %v2002_v49 = vpop.f32.mrb[15].mxu0  ;;  %v1835_v53 = vmul.f32 -1.442695, %v565_v46 }
 0x66e   :  { %2182 = vpow2.f32 %v1831_v52 }
 0x66f   :  { %2184 = vpow2.f32 %v1835_v53 }
 0x671   :  { %v2179_v50 = vpop.eup %2178 }
 0x672   :  { %491 = vrot.lane.b32.xlu0 %v2179_v50, %s2339_s19 }
 0x677   :  { %v2181_v51 = vpop.eup %2180 }
 0x678   :  { %579 = vrot.lane.b32.xlu1 %v2181_v51, %s2339_s19  ;;  %v2183_v54 = vpop.eup %2182 }
 0x679   :  { %v485_v55 = vadd.f32 1.0, %v2183_v54  ;;  %v2185_v56 = vpop.eup %2184 }
 0x67a   :  { %v573_v57 = vadd.f32 1.0, %v2185_v56 }
 0x67b   :  { %2186 = vrcp.f32 %v485_v55 }
 0x67c   :  { %2188 = vrcp.f32 %v573_v57 }
 0x685   :  { %v2187_v58 = vpop.eup %2186 }
 0x686   :  { %v2189_v61 = vpop.eup %2188  ;;  %v489_v3 = vmul.f32 %v2187_v58, %v2513_v17 }
 0x687   :  { %v577_v6 = vmul.f32 %v2189_v61, %v2510_v15 }
 0x6e4   :  { %v492_v59 = vpop.permute.xlu0 %491 }
 0x6e5   :  { %v494_v60 = vmul.f32 %v2187_v58, %v492_v59 }
 0x6e7   :  { %496 = vrot.lane.b32.xlu0 %v494_v60, %s2340_s20 }
 0x6ea   :  { %v580_v62 = vpop.permute.xlu1 %579 }
 0x6eb   :  { %v582_v63 = vmul.f32 %v2189_v61, %v580_v62 }
 0x6ed   :  { %584 = vrot.lane.b32.xlu1 %v582_v63, %s2340_s20 }
 0x759   :  { %v497_v4 = vpop.permute.xlu0 %496 }
 0x75a   :  { %v2553_v5 = vadd.f32 %v497_v4, %v489_v3 }
 0x75c   :  { %2190 = vtanh.f32 %v2553_v5 }
 0x75f   :  { %v585_v7 = vpop.permute.xlu1 %584 }
 0x760   :  { %v2557_v8 = vadd.f32 %v585_v7, %v577_v6 }
 0x762   :  { %2192 = vtanh.f32 %v2557_v8 }
 0x766   :  { %v2191_v9 = vpop.eup %2190 }
 0x767   :  { %502 = vrot.lane.b32.xlu0 %v2191_v9, %s2339_s19 }
 0x76c   :  { %v2193_v10 = vpop.eup %2192 }
 0x76d   :  { %590 = vrot.lane.b32.xlu1 %v2193_v10, %s2339_s19 }
 0x7d9   :  { %v503_v11 = vpop.permute.xlu0 %502 }
 0x7da   :  { %v505_v12 = vmul.f32 %v2187_v58, %v503_v11 }
 0x7dc   :  { %v2562_v13 = vpack.c.bf16 %v505_v12, %v505_v12 }
 0x7de   :  { %595 = vrot.lane.b32.xlu0 %v2562_v13, %s2340_s20 }
 0x7df   :  { %v591_v14 = vpop.permute.xlu1 %590 }
 0x7e0   :  { %v593_v15 = vmul.f32 %v2189_v61, %v591_v14 }
 0x7e2   :  { %v594_v16 = vpack.c.bf16 %v593_v15, %v593_v15 }
 0x7e4   :  { %641 = vrot.lane.b32.xlu1 %v594_v16, %s2340_s20 }
 0x850   :  { %v596_v17 = vpop.permute.xlu0 %595 }
 0x851   :  { %2008 = vmatmul.mubr.msk.bf16.vlgmr.msra.gmra.mrb[12].mxu1 %vm79_vm2, %v596_v17 }
 0x852   :  { %2020 = vmatpush3.bf16.msra.mxu1 %v2399_v0  ;;  %2023 = vmatprep.mubr.msk.bf16.mxu1 %vm2338_vm0, %v2337_v1 }
 0x853   :  { %2021 = vmatprep.subr.bf16.mxu1 %v2337_v1 }
 0x856   :  { %2022 = vmatpush3.bf16.msra.mxu1 %v2407_v2  ;;  %v642_v18 = vpop.permute.xlu1 %641 }
 0x857   :  { %2016 = vmatmul.mubr.msk.bf16.vlgmr.msra.gmra.mrb[16].mxu0 %vm79_vm2, %v642_v18  ;;  %2035 = vmatprep.subr.bf16.mxu1 %v2337_v1 }
 0x858   :  { %2028 = vmatpush3.bf16.msra.mxu0 %v2439_v26  ;;  %2031 = vmatprep.mubr.msk.bf16.mxu0 %vm2338_vm0, %v2337_v1 }
 0x859   :  { %2024 = vmatmul.mubr.msk.bf16.vlgmr.msra.gmra.mrb[16].mxu1 %vm79_vm2, %v642_v18  ;;  %2029 = vmatprep.subr.bf16.mxu0 %v2337_v1  ;;  %v1847_v18 = vld [vmem:[%s2900_s0 + $0x4] sm:$0x1] }
 0x85a   :  { %2036 = vmatpush3.bf16.msra.mxu1 %v2448_v28  ;;  %2039 = vmatprep.mubr.msk.bf16.mxu1 %vm2338_vm0, %v2337_v1 }
 0x85b   :  { %2037 = vmatprep.subr.bf16.mxu1 %v2337_v1 }
 0x85c   :  { %2030 = vmatpush3.bf16.msra.mxu0 %v2454_v29 }
 0x85d   :  { %2043 = vmatprep.subr.bf16.mxu0 %v2337_v1 }
 0x85e   :  { %2038 = vmatpush3.bf16.msra.mxu1 %v2461_v30 }
 0x85f   :  { %2051 = vmatprep.subr.bf16.mxu1 %v2337_v1 }
 0x924   :  { %v634_v19 = vpop.f32.mrb[12].mxu1 }
 0x925   :  { %v2009_v20 = vpop.f32.mrb[13].mxu1 }
 0x926   :  { %v637_v21 = vpop.f32.mrb[14].mxu1 }
 0x927   :  { %v2010_v23 = vpop.f32.mrb[15].mxu1 }
 0x928   :  { %v939_v23 = vunpack.c.l.bf16 %v1847_v18 }
 0x92a   :  { %v680_v27 = vpop.f32.mrb[16].mxu0 }
 0x92b   :  { %v681_v31 = vadd.f32 %v680_v27, %v634_v19  ;;  %v2017_v32 = vpop.f32.mrb[17].mxu0 }
 0x92c   :  { %v683_v33 = vpop.f32.mrb[18].mxu0  ;;  %v769_v34 = vpop.f32.mrb[16].mxu1 }
 0x92d   :  { %v686_v35 = vadd.f32 %v2501_v45, %v681_v31  ;;  %v770_v36 = vadd.f32 %v769_v34, %v734_v24  ;;  %v2018_v37 = vpop.f32.mrb[19].mxu0  ;;  %v2025_v38 = vpop.f32.mrb[17].mxu1 }
 0x92e   :  { %v772_v39 = vpop.f32.mrb[18].mxu1 }
 0x92f   :  { %2194 = vtanh.f32 %v686_v35  ;;  %v2026_v40 = vpop.f32.mrb[19].mxu1  ;;  %v1838_v43 = vmul.f32 -1.442695, %v686_v35  ;;  %v1842_v44 = vmul.f32 -1.442695, %v770_v36 }
 0x930   :  { %2196 = vtanh.f32 %v770_v36 }
 0x931   :  { %2198 = vpow2.f32 %v1838_v43 }
 0x932   :  { %2200 = vpow2.f32 %v1842_v44 }
 0x939   :  { %v2195_v41 = vpop.eup %2194 }
 0x93a   :  { %v2197_v42 = vpop.eup %2196  ;;  %696 = vrot.lane.b32.xlu0 %v2195_v41, %s2339_s19 }
 0x93b   :  { %784 = vrot.lane.b32.xlu1 %v2197_v42, %s2339_s19  ;;  %v2199_v46 = vpop.eup %2198 }
 0x93c   :  { %v2201_v47 = vpop.eup %2200  ;;  %v690_v48 = vadd.f32 1.0, %v2199_v46 }
 0x93d   :  { %v778_v49 = vadd.f32 1.0, %v2201_v47 }
 0x93e   :  { %2202 = vrcp.f32 %v690_v48 }
 0x93f   :  { %2204 = vrcp.f32 %v778_v49 }
 0x948   :  { %v2203_v50 = vpop.eup %2202 }
 0x949   :  { %v2205_v52 = vpop.eup %2204  ;;  %v694_v56 = vmul.f32 %v2203_v50, %v2553_v5 }
 0x94a   :  { %v782_v57 = vmul.f32 %v2205_v52, %v2557_v8 }
 0x9ac   :  { %v697_v51 = vpop.permute.xlu0 %696 }
 0x9ad   :  { %v785_v53 = vpop.permute.xlu1 %784  ;;  %v699_v54 = vmul.f32 %v2203_v50, %v697_v51 }
 0x9ae   :  { %v787_v55 = vmul.f32 %v2205_v52, %v785_v53 }
 0x9af   :  { %701 = vrot.lane.b32.xlu0 %v699_v54, %s2340_s20 }
 0x9b0   :  { %789 = vrot.lane.b32.xlu1 %v787_v55, %s2340_s20 }
 0xa21   :  { %v702_v58 = vpop.permute.xlu0 %701 }
 0xa22   :  { %v790_v59 = vpop.permute.xlu1 %789  ;;  %v2598_v60 = vadd.f32 %v702_v58, %v694_v56 }
 0xa23   :  { %v2600_v61 = vadd.f32 %v790_v59, %v782_v57 }
 0xa24   :  { %2206 = vtanh.f32 %v2598_v60 }
 0xa25   :  { %2208 = vtanh.f32 %v2600_v61 }
 0xa2e   :  { %v2207_v62 = vpop.eup %2206 }
 0xa2f   :  { %v2209_v63 = vpop.eup %2208  ;;  %707 = vrot.lane.b32.xlu0 %v2207_v62, %s2339_s19 }
 0xa30   :  { %795 = vrot.lane.b32.xlu1 %v2209_v63, %s2339_s19 }
 0xaa1   :  { %v708_v3 = vpop.permute.xlu0 %707 }
 0xaa2   :  { %v796_v4 = vpop.permute.xlu1 %795  ;;  %v710_v5 = vmul.f32 %v2203_v50, %v708_v3 }
 0xaa3   :  { %v798_v6 = vmul.f32 %v2205_v52, %v796_v4 }
 0xaa4   :  { %v2606_v7 = vpack.c.bf16 %v710_v5, %v710_v5 }
 0xaa5   :  { %v799_v8 = vpack.c.bf16 %v798_v6, %v798_v6 }
 0xaa6   :  { %800 = vrot.lane.b32.xlu0 %v2606_v7, %s2340_s20 }
 0xaa7   :  { %846 = vrot.lane.b32.xlu1 %v799_v8, %s2340_s20  ;;  %v1854_v8 = vld [vmem:[%s2900_s0 + $0x5] sm:$0x1] }
 0xb18   :  { %v801_v9 = vpop.permute.xlu0 %800 }
 0xb19   :  { %v847_v10 = vpop.permute.xlu1 %846  ;;  %2032 = vmatmul.mubr.msk.bf16.vlgmr.msra.gmra.mrb[20].mxu0 %vm79_vm2, %v801_v9 }
 0xb1a   :  { %2040 = vmatmul.mubr.msk.bf16.vlgmr.msra.gmra.mrb[20].mxu1 %vm79_vm2, %v847_v10  ;;  %2044 = vmatpush3.bf16.msra.mxu0 %v2399_v0 }
 0xb1b   :  { %2045 = vmatprep.subr.bf16.mxu0 %v2337_v1  ;;  %2047 = vmatprep.mubr.msk.bf16.mxu0 %vm2338_vm0, %v2337_v1 }
 0xb1c   :  { %2052 = vmatpush3.bf16.msra.mxu1 %v2439_v26  ;;  %2055 = vmatprep.mubr.msk.bf16.mxu1 %vm2338_vm0, %v2337_v1 }
 0xb1d   :  { %2053 = vmatprep.subr.bf16.mxu1 %v2337_v1 }
 0xb1e   :  { %2046 = vmatpush3.bf16.msra.mxu0 %v2407_v2 }
 0xb1f   :  { %2059 = vmatprep.subr.bf16.mxu0 %v2337_v1 }
 0xb20   :  { %2054 = vmatpush3.bf16.msra.mxu1 %v2454_v29 }
 0xb21   :  { %2048 = vmatmul.mubr.msk.bf16.vlgmr.msra.gmra.mrb[24].mxu0 %vm79_vm2, %v847_v10  ;;  %2067 = vmatprep.subr.bf16.mxu1 %v2337_v1 }
 0xb22   :  { %2060 = vmatpush3.bf16.msra.mxu0 %v2448_v28  ;;  %2063 = vmatprep.mubr.msk.bf16.mxu0 %vm2338_vm0, %v2337_v1 }
 0xb23   :  { %2061 = vmatprep.subr.bf16.mxu0 %v2337_v1 }
 0xb26   :  { %2062 = vmatpush3.bf16.msra.mxu0 %v2461_v30 }
 0xb27   :  { %2075 = vmatprep.subr.bf16.mxu0 %v2337_v1 }
 0xbec   :  { %v839_v11 = vpop.f32.mrb[20].mxu0 }
 0xbed   :  { %v885_v12 = vpop.f32.mrb[20].mxu1  ;;  %v2033_v14 = vpop.f32.mrb[21].mxu0 }
 0xbee   :  { %v886_v15 = vadd.f32 %v885_v12, %v839_v11  ;;  %v2041_v16 = vpop.f32.mrb[21].mxu1  ;;  %v842_v17 = vpop.f32.mrb[22].mxu0  ;;  %v1144_v11 = vunpack.c.l.bf16 %v1854_v8 }
 0xbef   :  { %v888_v19 = vpop.f32.mrb[22].mxu1  ;;  %v2034_v20 = vpop.f32.mrb[23].mxu0 }
 0xbf0   :  { %v891_v21 = vadd.f32 %v2501_v45, %v886_v15  ;;  %v2042_v22 = vpop.f32.mrb[23].mxu1 }
 0xbf2   :  { %2210 = vtanh.f32 %v891_v21  ;;  %v1845_v36 = vmul.f32 -1.442695, %v891_v21 }
 0xbf4   :  { %v974_v24 = vpop.f32.mrb[24].mxu0 }
 0xbf5   :  { %v975_v27 = vadd.f32 %v974_v24, %v939_v23  ;;  %v2049_v31 = vpop.f32.mrb[25].mxu0 }
 0xbf6   :  { %v977_v32 = vpop.f32.mrb[26].mxu0 }
 0xbf7   :  { %2212 = vtanh.f32 %v975_v27  ;;  %v2050_v33 = vpop.f32.mrb[27].mxu0  ;;  %v1849_v37 = vmul.f32 -1.442695, %v975_v27 }
 0xbf8   :  { %2214 = vpow2.f32 %v1845_v36 }
 0xbf9   :  { %2216 = vpow2.f32 %v1849_v37 }
 0xbfc   :  { %v2211_v34 = vpop.eup %2210 }
 0xbfd   :  { %901 = vrot.lane.b32.xlu0 %v2211_v34, %s2339_s19 }
 0xc01   :  { %v2213_v35 = vpop.eup %2212 }
 0xc02   :  { %989 = vrot.lane.b32.xlu1 %v2213_v35, %s2339_s19  ;;  %v2215_v38 = vpop.eup %2214 }
 0xc03   :  { %v895_v39 = vadd.f32 1.0, %v2215_v38  ;;  %v2217_v40 = vpop.eup %2216 }
 0xc04   :  { %v983_v41 = vadd.f32 1.0, %v2217_v40 }
 0xc05   :  { %2218 = vrcp.f32 %v895_v39 }
 0xc06   :  { %2220 = vrcp.f32 %v983_v41 }
 0xc0f   :  { %v2219_v42 = vpop.eup %2218 }
 0xc10   :  { %v2221_v46 = vpop.eup %2220  ;;  %v899_v49 = vmul.f32 %v2219_v42, %v2598_v60 }
 0xc11   :  { %v987_v52 = vmul.f32 %v2221_v46, %v2600_v61 }
 0xc6f   :  { %v902_v43 = vpop.permute.xlu0 %901 }
 0xc70   :  { %v904_v44 = vmul.f32 %v2219_v42, %v902_v43 }
 0xc72   :  { %906 = vrot.lane.b32.xlu0 %v904_v44, %s2340_s20 }
 0xc74   :  { %v990_v47 = vpop.permute.xlu1 %989 }
 0xc75   :  { %v992_v48 = vmul.f32 %v2221_v46, %v990_v47 }
 0xc77   :  { %994 = vrot.lane.b32.xlu1 %v992_v48, %s2340_s20 }
 0xce4   :  { %v907_v50 = vpop.permute.xlu0 %906 }
 0xce5   :  { %v2641_v51 = vadd.f32 %v907_v50, %v899_v49 }
 0xce7   :  { %2222 = vtanh.f32 %v2641_v51 }
 0xce9   :  { %v995_v53 = vpop.permute.xlu1 %994 }
 0xcea   :  { %v2645_v54 = vadd.f32 %v995_v53, %v987_v52 }
 0xcec   :  { %2224 = vtanh.f32 %v2645_v54 }
 0xcf1   :  { %v2223_v55 = vpop.eup %2222 }
 0xcf2   :  { %912 = vrot.lane.b32.xlu0 %v2223_v55, %s2339_s19 }
 0xcf6   :  { %v2225_v56 = vpop.eup %2224 }
 0xcf7   :  { %1000 = vrot.lane.b32.xlu1 %v2225_v56, %s2339_s19 }
 0xd64   :  { %v913_v57 = vpop.permute.xlu0 %912 }
 0xd65   :  { %v915_v58 = vmul.f32 %v2219_v42, %v913_v57 }
 0xd67   :  { %v2650_v59 = vpack.c.bf16 %v915_v58, %v915_v58 }
 0xd69   :  { %1005 = vrot.lane.b32.xlu0 %v2650_v59, %s2340_s20  ;;  %v1001_v60 = vpop.permute.xlu1 %1000 }
 0xd6a   :  { %v1003_v61 = vmul.f32 %v2221_v46, %v1001_v60 }
 0xd6c   :  { %v1004_v62 = vpack.c.bf16 %v1003_v61, %v1003_v61 }
 0xd6e   :  { %1051 = vrot.lane.b32.xlu1 %v1004_v62, %s2340_s20  ;;  %v1861_v62 = vld [vmem:[%s2900_s0 + $0x6] sm:$0x1] }
 0xddb   :  { %v1006_v63 = vpop.permute.xlu0 %1005 }
 0xddc   :  { %2056 = vmatmul.mubr.msk.bf16.vlgmr.msra.gmra.mrb[24].mxu1 %vm79_vm2, %v1006_v63 }
 0xddd   :  { %2068 = vmatpush3.bf16.msra.mxu1 %v2399_v0  ;;  %2071 = vmatprep.mubr.msk.bf16.mxu1 %vm2338_vm0, %v2337_v1 }
 0xdde   :  { %2069 = vmatprep.subr.bf16.mxu1 %v2337_v1 }
 0xde0   :  { %v1052_v3 = vpop.permute.xlu1 %1051 }
 0xde1   :  { %2070 = vmatpush3.bf16.msra.mxu1 %v2407_v2  ;;  %2064 = vmatmul.mubr.msk.bf16.vlgmr.msra.gmra.mrb[28].mxu0 %vm79_vm2, %v1052_v3 }
 0xde2   :  { %2083 = vmatprep.subr.bf16.mxu1 %v2337_v1  ;;  %2076 = vmatpush3.bf16.msra.mxu0 %v2439_v26 }
 0xde3   :  { %2077 = vmatprep.subr.bf16.mxu0 %v2337_v1  ;;  %2079 = vmatprep.mubr.msk.bf16.mxu0 %vm2338_vm0, %v2337_v1 }
 0xde4   :  { %2072 = vmatmul.mubr.msk.bf16.vlgmr.msra.gmra.mrb[28].mxu1 %vm79_vm2, %v1052_v3 }
 0xde5   :  { %2084 = vmatpush3.bf16.msra.mxu1 %v2448_v28  ;;  %2087 = vmatprep.mubr.msk.bf16.mxu1 %vm2338_vm0, %v2337_v1 }
 0xde6   :  { %2085 = vmatprep.subr.bf16.mxu1 %v2337_v1  ;;  %2078 = vmatpush3.bf16.msra.mxu0 %v2454_v29 }
 0xde7   :  { %2091 = vmatprep.subr.bf16.mxu0 %v2337_v1 }
 0xde9   :  { %2086 = vmatpush3.bf16.msra.mxu1 %v2461_v30 }
 0xdea   :  { %2099 = vmatprep.subr.bf16.mxu1 %v2337_v1 }
 0xeaf   :  { %v1044_v4 = vpop.f32.mrb[24].mxu1 }
 0xeb0   :  { %v2057_v5 = vpop.f32.mrb[25].mxu1 }
 0xeb1   :  { %v1047_v6 = vpop.f32.mrb[26].mxu1  ;;  %v1349_v5 = vunpack.c.l.bf16 %v1861_v62 }
 0xeb2   :  { %v2058_v9 = vpop.f32.mrb[27].mxu1 }
 0xeb4   :  { %v1090_v10 = vpop.f32.mrb[28].mxu0 }
 0xeb5   :  { %v1091_v12 = vadd.f32 %v1090_v10, %v1044_v4  ;;  %v2065_v14 = vpop.f32.mrb[29].mxu0 }
 0xeb6   :  { %v1093_v15 = vpop.f32.mrb[30].mxu0 }
 0xeb7   :  { %v1096_v16 = vadd.f32 %v2501_v45, %v1091_v12  ;;  %v1179_v17 = vpop.f32.mrb[28].mxu1  ;;  %v2066_v18 = vpop.f32.mrb[31].mxu0 }
 0xeb8   :  { %v1180_v19 = vadd.f32 %v1179_v17, %v1144_v11  ;;  %v2073_v20 = vpop.f32.mrb[29].mxu1 }
 0xeb9   :  { %2226 = vtanh.f32 %v1096_v16  ;;  %v1182_v21 = vpop.f32.mrb[30].mxu1  ;;  %v1852_v27 = vmul.f32 -1.442695, %v1096_v16 }
 0xeba   :  { %2228 = vtanh.f32 %v1180_v19  ;;  %v2074_v22 = vpop.f32.mrb[31].mxu1  ;;  %v1856_v31 = vmul.f32 -1.442695, %v1180_v19 }
 0xebb   :  { %2230 = vpow2.f32 %v1852_v27 }
 0xebc   :  { %2232 = vpow2.f32 %v1856_v31 }
 0xec3   :  { %v2227_v23 = vpop.eup %2226 }
 0xec4   :  { %v2229_v24 = vpop.eup %2228  ;;  %1106 = vrot.lane.b32.xlu0 %v2227_v23, %s2339_s19 }
 0xec5   :  { %1194 = vrot.lane.b32.xlu1 %v2229_v24, %s2339_s19  ;;  %v2231_v32 = vpop.eup %2230 }
 0xec6   :  { %v2233_v33 = vpop.eup %2232  ;;  %v1100_v34 = vadd.f32 1.0, %v2231_v32 }
 0xec7   :  { %v1188_v35 = vadd.f32 1.0, %v2233_v33 }
 0xec8   :  { %2234 = vrcp.f32 %v1100_v34 }
 0xec9   :  { %2236 = vrcp.f32 %v1188_v35 }
 0xed2   :  { %v2235_v36 = vpop.eup %2234 }
 0xed3   :  { %v2237_v38 = vpop.eup %2236  ;;  %v1104_v42 = vmul.f32 %v2235_v36, %v2641_v51 }
 0xed4   :  { %v1192_v43 = vmul.f32 %v2237_v38, %v2645_v54 }
 0xf36   :  { %v1107_v37 = vpop.permute.xlu0 %1106 }
 0xf37   :  { %v1195_v39 = vpop.permute.xlu1 %1194  ;;  %v1109_v40 = vmul.f32 %v2235_v36, %v1107_v37 }
 0xf38   :  { %v1197_v41 = vmul.f32 %v2237_v38, %v1195_v39 }
 0xf39   :  { %1111 = vrot.lane.b32.xlu0 %v1109_v40, %s2340_s20 }
 0xf3a   :  { %1199 = vrot.lane.b32.xlu1 %v1197_v41, %s2340_s20 }
 0xfab   :  { %v1112_v44 = vpop.permute.xlu0 %1111 }
 0xfac   :  { %v1200_v46 = vpop.permute.xlu1 %1199  ;;  %v2686_v47 = vadd.f32 %v1112_v44, %v1104_v42 }
 0xfad   :  { %v2688_v48 = vadd.f32 %v1200_v46, %v1192_v43 }
 0xfae   :  { %2238 = vtanh.f32 %v2686_v47 }
 0xfaf   :  { %2240 = vtanh.f32 %v2688_v48 }
 0xfb8   :  { %v2239_v49 = vpop.eup %2238 }
 0xfb9   :  { %v2241_v50 = vpop.eup %2240  ;;  %1117 = vrot.lane.b32.xlu0 %v2239_v49, %s2339_s19  ;;  %v2283_v49 = vld [vmem:[%s2903_s3 + $0x8] sm:$0xff]  }
 0xfba   :  { %1205 = vrot.lane.b32.xlu1 %v2241_v50, %s2339_s19  ;;  %v2284_v50 = vld [vmem:[%s2905_s5] sm:$0xff]  }
0x102b   :  { %v1118_v52 = vpop.permute.xlu0 %1117 }
0x102c   :  { %v1206_v51 = vpop.permute.xlu1 %1205  ;;  %v1120_v53 = vmul.f32 %v2235_v36, %v1118_v52  ;;  %v2285_v52 = vld [vmem:[%s2904_s4] sm:$0xff]  }
0x102d   :  { %v1208_v54 = vmul.f32 %v2237_v38, %v1206_v51  ;;  %v2286_v51 = vld [vmem:[%s2905_s5 + $0x8] sm:$0xff]   ;;  %s2342_s5 = smov 96  }
0x102e   :  { %v2694_v55 = vpack.c.bf16 %v1120_v53, %v1120_v53  ;;  %v2287_v53 = vld [vmem:[%s2904_s4 + $0x8] sm:$0xff]  }
0x102f   :  { %v1209_v56 = vpack.c.bf16 %v1208_v54, %v1208_v54 }
0x1030   :  { %1210 = vrot.lane.b32.xlu0 %v2694_v55, %s2340_s20 }
0x1031   :  { %1256 = vrot.lane.b32.xlu1 %v1209_v56, %s2340_s20 }
0x10a2   :  { %v1211_v57 = vpop.permute.xlu0 %1210 }
0x10a3   :  { %v1257_v58 = vpop.permute.xlu1 %1256  ;;  %2080 = vmatmul.mubr.msk.bf16.vlgmr.msra.gmra.mrb[32].mxu0 %vm79_vm2, %v1211_v57 }
0x10a4   :  { %2088 = vmatmul.mubr.msk.bf16.vlgmr.msra.gmra.mrb[32].mxu1 %vm79_vm2, %v1257_v58  ;;  %2092 = vmatpush3.bf16.msra.mxu0 %v2399_v0 }
0x10a5   :  { %2093 = vmatprep.subr.bf16.mxu0 %v2337_v1  ;;  %2095 = vmatprep.mubr.msk.bf16.mxu0 %vm2338_vm0, %v2337_v1 }
0x10a6   :  { %2100 = vmatpush3.bf16.msra.mxu1 %v2439_v26  ;;  %2103 = vmatprep.mubr.msk.bf16.mxu1 %vm2338_vm0, %v2337_v1 }
0x10a7   :  { %2101 = vmatprep.subr.bf16.mxu1 %v2337_v1 }
0x10a8   :  { %2094 = vmatpush3.bf16.msra.mxu0 %v2407_v2 }
0x10a9   :  { %2107 = vmatprep.subr.bf16.mxu0 %v2337_v1 }
0x10aa   :  { %2102 = vmatpush3.bf16.msra.mxu1 %v2454_v29 }
0x10ab   :  { %2096 = vmatmul.mubr.msk.bf16.vlgmr.msra.gmra.mrb[36].mxu0 %vm79_vm2, %v1257_v58  ;;  %2115 = vmatprep.subr.bf16.mxu1 %v2337_v1  ;;  %v1868_v58 = vld [vmem:[%s2900_s0 + $0x7] sm:$0x1] }
0x10ac   :  { %2108 = vmatpush3.bf16.msra.mxu0 %v2448_v28  ;;  %2111 = vmatprep.mubr.msk.bf16.mxu0 %vm2338_vm0, %v2337_v1 }
0x10ad   :  { %2109 = vmatprep.subr.bf16.mxu0 %v2337_v1 }
0x10b0   :  { %2110 = vmatpush3.bf16.msra.mxu0 %v2461_v30 }
0x10b1   :  { %2123 = vmatprep.subr.bf16.mxu0 %v2337_v1 }
0x1176   :  { %v1249_v0 = vpop.f32.mrb[32].mxu0 }
0x1177   :  { %v1295_v2 = vpop.f32.mrb[32].mxu1  ;;  %v2081_v26 = vpop.f32.mrb[33].mxu0 }
0x1178   :  { %v1296_v60 = vadd.f32 %v1295_v2, %v1249_v0  ;;  %v2089_v29 = vpop.f32.mrb[33].mxu1  ;;  %v1252_v61 = vpop.f32.mrb[34].mxu0 }
0x1179   :  { %v1298_v28 = vpop.f32.mrb[34].mxu1  ;;  %v2082_v63 = vpop.f32.mrb[35].mxu0 }
0x117a   :  { %v1301_v3 = vadd.f32 %v2501_v45, %v1296_v60  ;;  %v2090_v4 = vpop.f32.mrb[35].mxu1 }
0x117c   :  { %2242 = vtanh.f32 %v1301_v3  ;;  %v1859_v14 = vmul.f32 -1.442695, %v1301_v3 }
0x117e   :  { %v1384_v30 = vpop.f32.mrb[36].mxu0 }
0x117f   :  { %v1385_v6 = vadd.f32 %v1384_v30, %v1349_v5  ;;  %v2097_v8 = vpop.f32.mrb[37].mxu0 }
0x1180   :  { %v1387_v9 = vpop.f32.mrb[38].mxu0 }
0x1181   :  { %2244 = vtanh.f32 %v1385_v6  ;;  %v2098_v10 = vpop.f32.mrb[39].mxu0  ;;  %v1863_v15 = vmul.f32 -1.442695, %v1385_v6 }
0x1182   :  { %2246 = vpow2.f32 %v1859_v14 }
0x1183   :  { %2248 = vpow2.f32 %v1863_v15 }
0x1186   :  { %v2243_v11 = vpop.eup %2242 }
0x1187   :  { %1311 = vrot.lane.b32.xlu0 %v2243_v11, %s2339_s19 }
0x118b   :  { %v2245_v12 = vpop.eup %2244 }
0x118c   :  { %1399 = vrot.lane.b32.xlu1 %v2245_v12, %s2339_s19  ;;  %v2247_v16 = vpop.eup %2246 }
0x118d   :  { %v1305_v17 = vadd.f32 1.0, %v2247_v16  ;;  %v2249_v18 = vpop.eup %2248 }
0x118e   :  { %v1393_v19 = vadd.f32 1.0, %v2249_v18 }
0x118f   :  { %2250 = vrcp.f32 %v1305_v17 }
0x1190   :  { %2252 = vrcp.f32 %v1393_v19 }
0x1199   :  { %v2251_v20 = vpop.eup %2250 }
0x119a   :  { %v2253_v23 = vpop.eup %2252  ;;  %v1309_v31 = vmul.f32 %v2251_v20, %v2686_v47  ;;  %v2282_v47 = vld [vmem:[%s2903_s3] sm:$0xff]  }
0x119b   :  { %v1397_v34 = vmul.f32 %v2253_v23, %v2688_v48 }
0x11f9   :  { %v1312_v21 = vpop.permute.xlu0 %1311 }
0x11fa   :  { %v1314_v22 = vmul.f32 %v2251_v20, %v1312_v21 }
0x11fc   :  { %1316 = vrot.lane.b32.xlu0 %v1314_v22, %s2340_s20 }
0x11fe   :  { %v1400_v24 = vpop.permute.xlu1 %1399 }
0x11ff   :  { %v1402_v27 = vmul.f32 %v2253_v23, %v1400_v24 }
0x1201   :  { %1404 = vrot.lane.b32.xlu1 %v1402_v27, %s2340_s20 }
0x126e   :  { %v1317_v32 = vpop.permute.xlu0 %1316 }
0x126f   :  { %v2729_v33 = vadd.f32 %v1317_v32, %v1309_v31 }
0x1271   :  { %2254 = vtanh.f32 %v2729_v33 }
0x1273   :  { %v1405_v35 = vpop.permute.xlu1 %1404 }
0x1274   :  { %v2733_v36 = vadd.f32 %v1405_v35, %v1397_v34 }
0x1276   :  { %2256 = vtanh.f32 %v2733_v36 }
0x127b   :  { %v2255_v37 = vpop.eup %2254 }
0x127c   :  { %1322 = vrot.lane.b32.xlu0 %v2255_v37, %s2339_s19 }
0x1280   :  { %v2257_v38 = vpop.eup %2256 }
0x1281   :  { %1410 = vrot.lane.b32.xlu1 %v2257_v38, %s2339_s19 }
0x12ee   :  { %v1323_v39 = vpop.permute.xlu0 %1322 }
0x12ef   :  { %v1325_v40 = vmul.f32 %v2251_v20, %v1323_v39 }
0x12f1   :  { %v2738_v41 = vpack.c.bf16 %v1325_v40, %v1325_v40 }
0x12f3   :  { %1415 = vrot.lane.b32.xlu0 %v2738_v41, %s2340_s20  ;;  %v1411_v42 = vpop.permute.xlu1 %1410 }
0x12f4   :  { %v1413_v43 = vmul.f32 %v2253_v23, %v1411_v42 }
0x12f6   :  { %v1414_v44 = vpack.c.bf16 %v1413_v43, %v1413_v43 }
0x12f8   :  { %1461 = vrot.lane.b32.xlu1 %v1414_v44, %s2340_s20 }
0x1365   :  { %v1416_v46 = vpop.permute.xlu0 %1415 }
0x1366   :  { %2104 = vmatmul.mubr.msk.bf16.vlgmr.msra.gmra.mrb[36].mxu1 %vm79_vm2, %v1416_v46 }
0x1367   :  { %2116 = vmatpush3.bf16.msra.mxu1 %v2282_v47  ;;  %2119 = vmatprep.mubr.msk.bf16.mxu1 %vm2338_vm0, %v2337_v1 }
0x1368   :  { %2117 = vmatprep.subr.bf16.mxu1 %v2337_v1 }
0x136a   :  { %v1462_v48 = vpop.permute.xlu1 %1461 }
0x136b   :  { %2118 = vmatpush3.bf16.msra.mxu1 %v2283_v49  ;;  %2112 = vmatmul.mubr.msk.bf16.vlgmr.msra.gmra.mrb[40].mxu0 %vm79_vm2, %v1462_v48 }
0x136c   :  { %2131 = vmatprep.subr.bf16.mxu1 %v2337_v1  ;;  %2124 = vmatpush3.bf16.msra.mxu0 %v2284_v50 }
0x136d   :  { %2125 = vmatprep.subr.bf16.mxu0 %v2337_v1  ;;  %2127 = vmatprep.mubr.msk.bf16.mxu0 %vm2338_vm0, %v2337_v1 }
0x136e   :  { %2120 = vmatmul.mubr.msk.bf16.vlgmr.msra.gmra.mrb[40].mxu1 %vm79_vm2, %v1462_v48 }
0x136f   :  { %2132 = vmatpush3.bf16.msra.mxu1 %v2285_v52  ;;  %2135 = vmatprep.mubr.msk.bf16.mxu1 %vm2338_vm0, %v2337_v1  ;;  %v2288_v52 = vld [vmem:[%s2906_s6] ss:$0 sm:$0xff] }
0x1370   :  { %2133 = vmatprep.subr.bf16.mxu1 %v2337_v1  ;;  %2126 = vmatpush3.bf16.msra.mxu0 %v2286_v51  ;;  %v1554_v1 = vunpack.c.l.bf16 %v1868_v58 }
0x1373   :  { %2134 = vmatpush3.bf16.msra.mxu1 %v2287_v53 }
0x1439   :  { %v1454_v54 = vpop.f32.mrb[36].mxu1 }
0x143a   :  { %v2105_v56 = vpop.f32.mrb[37].mxu1 }
0x143b   :  { %v1457_v57 = vpop.f32.mrb[38].mxu1 }
0x143c   :  { %v2106_v0 = vpop.f32.mrb[39].mxu1 }
0x143d   :  { %v2341_v0 = vmov 1966171168  }
0x143e   :  { %v1500_v2 = vpop.f32.mrb[40].mxu0 }
0x143f   :  { %v1501_v26 = vadd.f32 %v1500_v2, %v1454_v54  ;;  %v2113_v60 = vpop.f32.mrb[41].mxu0  ;;  %v304_v2 = vunpack.c.l.s4 %v2341_v0 }
0x1440   :  { %v1503_v29 = vpop.f32.mrb[42].mxu0 }
0x1441   :  { %v1506_v61 = vadd.f32 %v2501_v45, %v1501_v26  ;;  %v1589_v62 = vpop.f32.mrb[40].mxu1  ;;  %v2114_v28 = vpop.f32.mrb[43].mxu0  ;;  %v305_v29 = vunpack.c.0.s8 %v304_v2 }
0x1442   :  { %v1590_v63 = vadd.f32 %v1589_v62, %v1554_v1  ;;  %v2121_v3 = vpop.f32.mrb[41].mxu1  ;;  %v306_v1 = vlaneseq }
0x1443   :  { %2258 = vtanh.f32 %v1506_v61  ;;  %v1592_v4 = vpop.f32.mrb[42].mxu1  ;;  %v1866_v8 = vmul.f32 -1.442695, %v1506_v61 }
0x1444   :  { %2260 = vtanh.f32 %v1590_v63  ;;  %v2122_v5 = vpop.f32.mrb[43].mxu1  ;;  %v1870_v9 = vmul.f32 -1.442695, %v1590_v63  ;;  %v307_v61 = vshrl.u32 %v306_v1, 7 }
0x1445   :  { %2262 = vpow2.f32 %v1866_v8 }
0x1446   :  { %2264 = vpow2.f32 %v1870_v9  ;;  %v2798_v28 = vsub.s32 %v305_v29, %v307_v61 }
0x1448   :  { %v309_v63 = vrot.slane %v2518_v25, %v2798_v28  ;;  %v719_v3 = vrot.slane %v2606_v7, %v2798_v28  ;;  %v1129_v5 = vrot.slane %v2694_v55, %v2798_v28 }
0x144a   :  { %v316_v4 = vrot.slane %v309_v63, %v2798_v28  ;;  %v1136_v25 = vrot.slane %v1129_v5, %v2798_v28 }
0x144d   :  { %v2259_v30 = vpop.eup %2258 }
0x144e   :  { %v2261_v6 = vpop.eup %2260  ;;  %1516 = vrot.lane.b32.xlu0 %v2259_v30, %s2339_s19  ;;  %v726_v30 = vrot.slane %v719_v3, %v2798_v28 }
0x144f   :  { %1604 = vrot.lane.b32.xlu1 %v2261_v6, %s2339_s19  ;;  %v2263_v10 = vpop.eup %2262 }
0x1450   :  { %v2265_v45 = vpop.eup %2264  ;;  %v1510_v11 = vadd.f32 1.0, %v2263_v10 }
0x1451   :  { %v1598_v12 = vadd.f32 1.0, %v2265_v45 }
0x1452   :  { %2266 = vrcp.f32 %v1510_v11 }
0x1453   :  { %2268 = vrcp.f32 %v1598_v12 }
0x145c   :  { %v2267_v14 = vpop.eup %2266 }
0x145d   :  { %v2269_v16 = vpop.eup %2268  ;;  %v1514_v20 = vmul.f32 %v2267_v14, %v2729_v33 }
0x145e   :  { %v1602_v21 = vmul.f32 %v2269_v16, %v2733_v36 }
0x14c0   :  { %v1517_v15 = vpop.permute.xlu0 %1516 }
0x14c1   :  { %v1605_v17 = vpop.permute.xlu1 %1604  ;;  %v1519_v18 = vmul.f32 %v2267_v14, %v1517_v15 }
0x14c2   :  { %v1607_v19 = vmul.f32 %v2269_v16, %v1605_v17 }
0x14c3   :  { %1521 = vrot.lane.b32.xlu0 %v1519_v18, %s2340_s20 }
0x14c4   :  { %1609 = vrot.lane.b32.xlu1 %v1607_v19, %s2340_s20 }
0x1535   :  { %v1522_v22 = vpop.permute.xlu0 %1521 }
0x1536   :  { %v1610_v23 = vpop.permute.xlu1 %1609  ;;  %v2784_v24 = vadd.f32 %v1522_v22, %v1514_v20 }
0x1537   :  { %v1612_v27 = vadd.f32 %v1610_v23, %v1602_v21 }
0x1538   :  { %2270 = vtanh.f32 %v2784_v24 }
0x1539   :  { %2272 = vtanh.f32 %v1612_v27 }
0x1542   :  { %v2271_v31 = vpop.eup %2270 }
0x1543   :  { %v2273_v32 = vpop.eup %2272  ;;  %1527 = vrot.lane.b32.xlu0 %v2271_v31, %s2339_s19 }
0x1544   :  { %1615 = vrot.lane.b32.xlu1 %v2273_v32, %s2339_s19 }
0x15b5   :  { %v1528_v34 = vpop.permute.xlu0 %1527 }
0x15b6   :  { %v1616_v35 = vpop.permute.xlu1 %1615  ;;  %v1530_v37 = vmul.f32 %v2267_v14, %v1528_v34  ;;  %v514_v14 = vrot.slane %v2562_v13, %v2798_v28  ;;  %v1334_v13 = vrot.slane %v2738_v41, %v2798_v28 }
0x15b7   :  { %v1618_v33 = vmul.f32 %v2269_v16, %v1616_v35  ;;  %v924_v16 = vrot.slane %v2650_v59, %v2798_v28 }
0x15b8   :  { %v1531_v38 = vpack.c.bf16 %v1530_v37, %v1530_v37  ;;  %v521_v18 = vrot.slane %v514_v14, %v2798_v28  ;;  %v1341_v59 = vrot.slane %v1334_v13, %v2798_v28 }
0x15b9   :  { %v1619_v36 = vpack.c.bf16 %v1618_v33, %v1618_v33  ;;  %v931_v20 = vrot.slane %v924_v16, %v2798_v28 }
0x15ba   :  { %1620 = vrot.lane.b32.xlu0 %v1531_v38, %s2340_s20  ;;  %v1539_v6 = vrot.slane %v1531_v38, %v2798_v28 }
0x15bb   :  { %1666 = vrot.lane.b32.xlu1 %v1619_v36, %s2340_s20 }
0x15bc   :  { %v1546_v8 = vrot.slane %v1539_v6, %v2798_v28 }
0x162c   :  { %v1621_v39 = vpop.permute.xlu0 %1620 }
0x162d   :  { %v1667_v40 = vpop.permute.xlu1 %1666  ;;  %2128 = vmatmul.mubr.msk.bf16.vlgmr.msra.gmra.mrb[44].mxu0 %vm79_vm2, %v1621_v39 }
0x162e   :  { %2136 = vmatmul.mubr.msk.bf16.vlgmr.msra.gmra.mrb[44].mxu1 %vm79_vm2, %v1667_v40 }
0x1700   :  { %v1659_v42 = vpop.f32.mrb[44].mxu0 }
0x1701   :  { %v1705_v43 = vpop.f32.mrb[44].mxu1  ;;  %v2129_v44 = vpop.f32.mrb[45].mxu0 }
0x1702   :  { %v1706_v46 = vadd.f32 %v1705_v43, %v1659_v42  ;;  %v2137_v47 = vpop.f32.mrb[45].mxu1  ;;  %v1662_v48 = vpop.f32.mrb[46].mxu0 }
0x1703   :  { %v1708_v49 = vpop.f32.mrb[46].mxu1  ;;  %v2130_v50 = vpop.f32.mrb[47].mxu0 }
0x1704   :  { %v1711_v51 = vadd.f32 %v2288_v52, %v1706_v46  ;;  %v2138_v53 = vpop.f32.mrb[47].mxu1 }
0x1706   :  { %2274 = vtanh.f32 %v1711_v51  ;;  %v1873_v56 = vmul.f32 -1.442695, %v1711_v51 }
0x1708   :  { %2276 = vpow2.f32 %v1873_v56 }
0x1710   :  { %v2275_v54 = vpop.eup %2274 }
0x1711   :  { %1721 = vrot.lane.b32.xlu0 %v2275_v54, %s2339_s19 }
0x1712   :  { %v2277_v57 = vpop.eup %2276 }
0x1713   :  { %v1715_v58 = vadd.f32 1.0, %v2277_v57 }
0x1715   :  { %2278 = vrcp.f32 %v1715_v58 }
0x171f   :  { %v2279_v26 = vpop.eup %2278 }
0x1720   :  { %v1719_v7 = vmul.f32 %v2279_v26, %v2784_v24 }
0x1783   :  { %v1722_v60 = vpop.permute.xlu0 %1721 }
0x1784   :  { %v1724_v62 = vmul.f32 %v2279_v26, %v1722_v60 }
0x1786   :  { %1726 = vrot.lane.b32.xlu1 %v1724_v62, %s2340_s20 }
0x178a   :  { %1758 = vrot.lane.b32.xlu1 %v1618_v33, %s2340_s20 }
0x178e   :  { %1769 = vrot.lane.b32.xlu1 %v1612_v27, %s2342_s5 }
0x1792   :  { %317 = vrot.lane.b32.xlu1 %v316_v4, %s2340_s20 }
0x1796   :  { %727 = vrot.lane.b32.xlu1 %v726_v30, %s2340_s20 }
0x179a   :  { %1137 = vrot.lane.b32.xlu1 %v1136_v25, %s2340_s20 }
0x179e   :  { %1547 = vrot.lane.b32.xlu1 %v1546_v8, %s2340_s20 }
0x17f8   :  { %v1727_v9 = vpop.permute.xlu1 %1726 }
0x17f9   :  { %v1729_v10 = vadd.f32 %v1727_v9, %v1719_v7 }
0x17fb   :  { %2280 = vtanh.f32 %v1729_v10 }
0x17fc   :  { %v1759_v55 = vpop.permute.xlu1 %1758 }
0x17fd   :  { %1762 = vst.msk [vmem:[#allocation2] sm:$0x3] %vm38_vm1, %v1759_v55 }
0x1800   :  { %v1770_v45 = vpop.permute.xlu1 %1769 }
0x1801   :  { %1772 = vst.msk [vmem:[#allocation4] sm:$0x3] %vm38_vm1, %v1770_v45 }
0x1804   :  { %v318_v11 = vpop.permute.xlu1 %317 }
0x1805   :  { %v2281_v12 = vpop.eup %2280  ;;  %321 = vst.msk [vmem:[%s2907_s7] sm:$0x1] %vm320_vm3, %v318_v11 }
0x1806   :  { %1732 = vrot.lane.b32.xlu0 %v2281_v12, %s2339_s19 }
0x1808   :  { %v728_v15 = vpop.permute.xlu1 %727 }
0x1809   :  { %1839 = vst.msk [vmem:[%s2907_s7 + $0x2] sm:$0x1] %vm320_vm3, %v728_v15 }
0x180a   :  { %1774 = vrot.lane.b32.xlu0 %v1729_v10, %s2342_s5 }
0x180c   :  { %v1138_v17 = vpop.permute.xlu1 %1137 }
0x180d   :  { %1853 = vst.msk [vmem:[%s2907_s7 + $0x4] sm:$0x1] %vm320_vm3, %v1138_v17 }
0x180e   :  { %522 = vrot.lane.b32.xlu0 %v521_v18, %s2340_s20 }
0x1810   :  { %v1548_v19 = vpop.permute.xlu1 %1547 }
0x1811   :  { %1867 = vst.msk [vmem:[%s2907_s7 + $0x6] sm:$0x1] %vm320_vm3, %v1548_v19 }
0x1812   :  { %932 = vrot.lane.b32.xlu0 %v931_v20, %s2340_s20 }
0x1816   :  { %1342 = vrot.lane.b32.xlu0 %v1341_v59, %s2340_s20 }
0x1878   :  { %v1733_v21 = vpop.permute.xlu0 %1732 }
0x1879   :  { %v1735_v22 = vmul.f32 %v2279_v26, %v1733_v21 }
0x187b   :  { %v1736_v23 = vpack.c.bf16 %v1735_v22, %v1735_v22  ;;  %1764 = vrot.lane.b32.xlu0 %v1735_v22, %s2340_s20 }
0x187c   :  { %v1775_v41 = vpop.permute.xlu0 %1774 }
0x187d   :  { %v1744_v24 = vrot.slane %v1736_v23, %v2798_v28  ;;  %1777 = vst.msk [vmem:[#allocation4 + $0x2] sm:$0x3] %vm38_vm1, %v1775_v41 }
0x187e   :  { %2300 = shalt.err (!%p2297_p4)
}
0x187f   :  { %s2301_s29 = scalar_lea.hbm %s2909_s9, 64 }
0x1880   :  { %p2302_p5 = scmp.ne.s32.totalorder %s2909_s9, %s2301_s29  ;;  %p2305_p6 = scmp.lt.u32.totalorder %s2301_s29, %s2909_s9 }
0x1882   :  { %p2307_p7 = pnand %p2305_p6, %p2302_p5 }
0x1884   :  { %2310 = shalt.err (!%p2307_p7)
}
0x1885   :  { %s2344_s3 = smov 2   ;;  %v1751_v27 = vrot.slane %v1744_v24, %v2798_v28  ;;  %v523_v31 = vpop.permute.xlu0 %522  ;;  %s2345_s5 = smov [#allocation2]  }
0x1886   :  { %1803 = dma.vmem_to_hbm [thread:$0]  %s1798_s25, 64, %s2909_s9, [#allocation5], %s2340_s20, %s2340_s20, %s2344_s3  }
0x1887   :  { %1832 = vst.msk [vmem:[%s2907_s7 + $0x1] sm:$0x1] %vm320_vm3, %v523_v31  ;;  %1752 = vrot.lane.b32.xlu0 %v1751_v27, %s2340_s20  ;;  %s1785_s6 = sshll.u32 %s2345_s5, 4  ;;  %s1786_s6 = int_to_ptr.vmem [resolvable:$true] %s1785_s6 }
0x1888   :  { %s2311_s16 = scalar_lea.vmem %s1786_s6, 64  ;;  %p2316_p9 = scmp.lt.s32.totalorder %s1786_s6, %s1786_s6 }
0x1889   :  { %v933_v32 = vpop.permute.xlu0 %932  ;;  %p2312_p8 = scmp.ne.s32.totalorder %s1786_s6, %s2311_s16  ;;  %p2317_p10 = scmp.lt.s32.totalorder %s2311_s16, %s2311_s16 }
0x188a   :  { %1846 = vst.msk [vmem:[%s2907_s7 + $0x3] sm:$0x1] %vm320_vm3, %v933_v32 }
0x188b   :  { %p2318_p11 = por %p2317_p10, %p2316_p9 }
0x188d   :  { %v1343_v34 = vpop.permute.xlu0 %1342  ;;  %p2319_p12 = pnand %p2318_p11, %p2312_p8 }
0x188e   :  { %1860 = vst.msk [vmem:[%s2907_s7 + $0x5] sm:$0x1] %vm320_vm3, %v1343_v34 }
0x18ed   :  { %v1765_v35 = vpop.permute.xlu0 %1764 }
0x18ee   :  { %1767 = vst.msk [vmem:[#allocation2 + $0x2] sm:$0x3] %vm38_vm1, %v1765_v35 }
0x18ef   :  { %2322 = shalt.err (!%p2319_p12)
}
0x18f0   :  { %s2323_s21 = scalar_lea.hbm %s2908_s8, 64 }
0x18f1   :  { %p2324_p13 = scmp.ne.s32.totalorder %s2908_s8, %s2323_s21  ;;  %p2327_p0 = scmp.lt.u32.totalorder %s2323_s21, %s2908_s8 }
0x18f3   :  { %p2329_p1 = pnand %p2327_p0, %p2324_p13 }
0x18f5   :  { %2332 = shalt.err (!%p2329_p1)
}
0x18f6   :  { %1791 = dma.vmem_to_hbm [thread:$0]  %s1786_s6, 64, %s2908_s8, [#allocation3], %s2340_s20, %s2340_s20, %s2344_s3  }
0x18f9   :  { %v1753_v37 = vpop.permute.xlu0 %1752 }
0x18fa   :  { %1874 = vst.msk [vmem:[%s2907_s7 + $0x7] sm:$0x1] %vm320_vm3, %v1753_v37 }
0x18fb   :  { %2333 = dma.done.wait [#allocation3], 64  }
0x18fc   :  { %2334 = vsyncadd [#allocation3], 4294967232 }
0x18fd   :  { %2335 = dma.done.wait [#allocation5], 64  }
0x18fe   :  { %2336 = vsyncadd [#allocation5], 4294967232 }
0x18ff   :  { %1812 = vsyncpa [#allocation3], 1 }
0x1900   :  { %1813 = vsyncpa [#allocation5], 1 }

</bundles_post_ra>
